<compile_context>
chip_gen: v7x
topology: tpu7x:2x2x1
jax: 0.10.0
libtpu: 0.0.40
codegen_flags: <defaults>
</compile_context>

<pallas_src>
import jax
import jax.numpy as jnp
from jax import lax
from jax.experimental import pallas as pl
from jax.experimental.pallas import tpu as pltpu

HIDDEN = 768               # BertConfig() default hidden_size
POOLED = HIDDEN - 2        # AvgPool1d(kernel_size=3, stride=1) on [B, 768] -> [B, 766]
CONCAT = 3 * POOLED        # 2298 == nn.Linear(in_features=2298, ...)
NUM_CLASSES = 3


def _full_spec(shape):
    # single grid step, whole array resident in VMEM
    return pl.BlockSpec(shape, lambda i: (0,) * len(shape))


_COMPILER_PARAMS = pltpu.CompilerParams(dimension_semantics=("arbitrary",))


# ---------------------------------------------------------------------------
# Shared in-kernel helper: BERT pooler (dense + tanh on the CLS hidden state)
# fused with AvgPool1d(kernel_size=3, stride=1) along the feature axis.
# Produces a LANE-DENSE [B, 768] tensor whose last two lanes are zeroed
# (those pool positions do not exist in torch's 766-wide output).
# ---------------------------------------------------------------------------
def _pool_from_cls(cls_bf16, wp_bf16, bp_f32):
    p = jnp.tanh(
        jnp.dot(cls_bf16, wp_bf16, preferred_element_type=jnp.float32) + bp_f32
    )                                                              # [B, 768] f32 pooler_output
    # out[:, i] = (p[:, i] + p[:, i+1] + p[:, i+2]) / 3 for i < 766.
    # roll(shift=767) == roll(-1) and roll(766) == roll(-2); the wrapped lanes 766/767
    # are masked to zero below.
    s = (p
         + pltpu.roll(p, shift=HIDDEN - 1, axis=1)
         + pltpu.roll(p, shift=HIDDEN - 2, axis=1))
    pooled = s * (1.0 / 3.0)
    lane = lax.broadcasted_iota(jnp.int32, pooled.shape, 1)
    return jnp.where(lane < POOLED, pooled, 0.0)                   # lanes 766/767 == 0


# ---------------------------------------------------------------------------
# Kernel 1: embedding objective (single sentence).
# ---------------------------------------------------------------------------
def embedding_kernel(cls_ref, wp_ref, bp_ref, out_ref):
    out_ref[...] = _pool_from_cls(cls_ref[...], wp_ref[...], bp_ref[...])


def sbert_embedding(cls1_bf16, params):
    B = cls1_bf16.shape[0]
    out = pl.pallas_call(
        embedding_kernel,
        grid=(1,),
        in_specs=[_full_spec((B, HIDDEN)),
                  _full_spec((HIDDEN, HIDDEN)),
                  _full_spec((1, HIDDEN))],
        out_specs=_full_spec((B, HIDDEN)),
        out_shape=jax.ShapeDtypeStruct((B, HIDDEN), jnp.float32),
        compiler_params=_COMPILER_PARAMS,
    )(cls1_bf16, params["w_pool_bf16"], params["b_pool"])
    return out[:, :POOLED]                                         # [B, 766] like torch


# ---------------------------------------------------------------------------
# Kernel 2: regression objective — both pooler passes + cosine similarity fused.
# torch.cosine_similarity(o1, o2, dim=1, eps=1e-8).
# ---------------------------------------------------------------------------
def regression_kernel(cls1_ref, cls2_ref, wp_ref, bp_ref, out_ref):
    wp = wp_ref[...]
    bp = bp_ref[...]
    o1 = _pool_from_cls(cls1_ref[...], wp, bp)                     # [B, 768], pad lanes 0
    o2 = _pool_from_cls(cls2_ref[...], wp, bp)
    dot = jnp.sum(o1 * o2, axis=1, keepdims=True)
    ss1 = jnp.sum(o1 * o1, axis=1, keepdims=True)
    ss2 = jnp.sum(o2 * o2, axis=1, keepdims=True)
    eps2 = jnp.float32(1e-16)                                      # eps**2, eps = 1e-8
    # dot / (max(||o1||,eps) * max(||o2||,eps)) via rsqrt on the EUP slot
    inv = lax.rsqrt(jnp.maximum(ss1, eps2)) * lax.rsqrt(jnp.maximum(ss2, eps2))
    out_ref[...] = dot * inv                                       # [B, 1]


def sbert_regression(cls1_bf16, cls2_bf16, params):
    B = cls1_bf16.shape[0]
    out = pl.pallas_call(
        regression_kernel,
        grid=(1,),
        in_specs=[_full_spec((B, HIDDEN)), _full_spec((B, HIDDEN)),
                  _full_spec((HIDDEN, HIDDEN)), _full_spec((1, HIDDEN))],
        out_specs=_full_spec((B, 1)),
        out_shape=jax.ShapeDtypeStruct((B, 1), jnp.float32),
        compiler_params=_COMPILER_PARAMS,
    )(cls1_bf16, cls2_bf16, params["w_pool_bf16"], params["b_pool"])
    return out.reshape(-1)                                         # [B], like torch


# ---------------------------------------------------------------------------
# Kernel 3: classification objective — both pooler passes + abs-diff/Linear/Softmax fused.
# The concat-matmul is decomposed into three matmuls against the pre-split (and
# zero-padded to 768 rows) weight: mathematically identical, keeps everything lane-dense.
# ---------------------------------------------------------------------------
def classification_kernel(cls1_ref, cls2_ref, wp_ref, bp_ref,
                          w1_ref, w2_ref, w3_ref, b_ref, out_ref):
    wp = wp_ref[...]
    bp = bp_ref[...]
    o1 = _pool_from_cls(cls1_ref[...], wp, bp)                     # [B, 768], pad lanes 0
    o2 = _pool_from_cls(cls2_ref[...], wp, bp)
    diff = jnp.abs(o1 - o2)
    logits = (jnp.dot(o1, w1_ref[...], preferred_element_type=jnp.float32)
              + jnp.dot(o2, w2_ref[...], preferred_element_type=jnp.float32)
              + jnp.dot(diff, w3_ref[...], preferred_element_type=jnp.float32)
              + b_ref[...])                                        # [B, 3]
    m = jnp.max(logits, axis=1, keepdims=True)
    e = jnp.exp(logits - m)
    out_ref[...] = e / jnp.sum(e, axis=1, keepdims=True)           # softmax(dim=1)


def sbert_classification(cls1_bf16, cls2_bf16, params):
    B = cls1_bf16.shape[0]
    return pl.pallas_call(
        classification_kernel,
        grid=(1,),
        in_specs=[_full_spec((B, HIDDEN)), _full_spec((B, HIDDEN)),
                  _full_spec((HIDDEN, HIDDEN)), _full_spec((1, HIDDEN)),
                  _full_spec((HIDDEN, NUM_CLASSES)), _full_spec((HIDDEN, NUM_CLASSES)),
                  _full_spec((HIDDEN, NUM_CLASSES)), _full_spec((1, NUM_CLASSES))],
        out_specs=_full_spec((B, NUM_CLASSES)),
        out_shape=jax.ShapeDtypeStruct((B, NUM_CLASSES), jnp.float32),
        compiler_params=_COMPILER_PARAMS,
    )(cls1_bf16, cls2_bf16, params["w_pool_bf16"], params["b_pool"],
      params["w_lin1"], params["w_lin2"], params["w_lin3"], params["b_lin"])


# ---------------------------------------------------------------------------
# Parameter setup glue (done once): bf16 pooler weight, zero-padded classifier weights.
# ---------------------------------------------------------------------------
def prepare_params(word_emb, w_pool, b_pool, w_lin, b_lin):
    def pad_rows(w):                                               # [766, 3] -> [768, 3]
        return jnp.concatenate(
            [w, jnp.zeros((HIDDEN - POOLED, w.shape[1]), w.dtype)], axis=0)
    return {
        "word_emb": word_emb,
        "w_pool_bf16": w_pool.astype(jnp.bfloat16),                # halves weight HBM DMA
        "b_pool": b_pool,                                          # f32, [1, 768]
        "w_lin1": pad_rows(w_lin[0:POOLED]),                       # o1 block,   [768, 3]
        "w_lin2": pad_rows(w_lin[POOLED:2 * POOLED]),              # o2 block,   [768, 3]
        "w_lin3": pad_rows(w_lin[2 * POOLED:3 * POOLED]),          # diff block, [768, 3]
        "b_lin": b_lin,                                            # [1, 3]
    }


# ---------------------------------------------------------------------------
# Glue: stand-in encoder producing the CLS hidden state consumed by the pooler.
# ---------------------------------------------------------------------------
def encode_cls(ids, word_emb):
    # TODO(synk): BertTokenizer (string processing) and the pretrained 12-layer BertModel
    # encoder have no clean Pallas equivalent here; stand in with a deterministic embedding
    # bag producing the [B, hidden] CLS representation fed to the BERT pooler.
    return jnp.mean(word_emb[ids], axis=1)                         # [B, 768] f32


def sbert_forward(params, ids1, ids2=None, objective="embedding"):
    cls1 = encode_cls(ids1, params["word_emb"]).astype(jnp.bfloat16)
    if objective == "embedding":
        return sbert_embedding(cls1, params)                       # [B, 766]
    cls2 = encode_cls(ids2, params["word_emb"]).astype(jnp.bfloat16)
    if objective == "regression":
        return sbert_regression(cls1, cls2, params)                # [B]
    if objective == "classification":
        return sbert_classification(cls1, cls2, params)            # [B, 3]
    raise ValueError(objective)


if __name__ == "__main__":
    B, S, VOCAB = 2, 8, 64
    key = jax.random.PRNGKey(0)
    k_emb, k_wp, k_bp, k_wl, k_bl, k_i1, k_i2 = jax.random.split(key, 7)

    params = prepare_params(
        word_emb=0.02 * jax.random.normal(k_emb, (VOCAB, HIDDEN), jnp.float32),
        w_pool=0.02 * jax.random.normal(k_wp, (HIDDEN, HIDDEN), jnp.float32),
        b_pool=0.02 * jax.random.normal(k_bp, (1, HIDDEN), jnp.float32),
        w_lin=0.02 * jax.random.normal(k_wl, (CONCAT, NUM_CLASSES), jnp.float32),
        b_lin=0.02 * jax.random.normal(k_bl, (1, NUM_CLASSES), jnp.float32),
    )
    ids1 = jax.random.randint(k_i1, (B, S), 0, VOCAB)
    ids2 = jax.random.randint(k_i2, (B, S), 0, VOCAB)

    emb = sbert_forward(params, ids1, objective="embedding")
    reg = sbert_forward(params, ids1, ids2, objective="regression")
    cls_out = sbert_forward(params, ids1, ids2, objective="classification")

    jax.block_until_ready((emb, reg, cls_out))
    assert emb.shape == (B, POOLED)
    assert reg.shape == (B,)
    assert cls_out.shape == (B, NUM_CLASSES)
    assert bool(jnp.all(jnp.isfinite(emb)))
    assert bool(jnp.all(jnp.abs(reg) <= 1.0 + 1e-3))
    assert bool(jnp.all(jnp.abs(jnp.sum(cls_out, axis=1) - 1.0) < 1e-4))
    print("KERNEL_OK")
</pallas_src>

<mosaic_0001>
module attributes {stable_mosaic.version = 11 : i64} {
  func.func @embedding_kernel(%arg0: i32, %arg1: memref<2x768xbf16, #tpu.memory_space<vmem>>, %arg2: memref<768x768xbf16, #tpu.memory_space<vmem>>, %arg3: memref<1x768xf32, #tpu.memory_space<vmem>>, %arg4: memref<2x768xf32, #tpu.memory_space<vmem>>) attributes {dimension_semantics = [#tpu.dimension_semantics<arbitrary>], iteration_bounds = array<i64: 1>, scalar_prefetch = 0 : i64, scratch_operands = 0 : i64, tpu.core_type = #tpu.core_type<tc>, window_params = [{pipeline_mode = #tpu.pipeline_mode<synchronous>, transform_indices = @transform_0, window_bounds = array<i64: 2, 768>}, {pipeline_mode = #tpu.pipeline_mode<synchronous>, transform_indices = @transform_1, window_bounds = array<i64: 768, 768>}, {pipeline_mode = #tpu.pipeline_mode<synchronous>, transform_indices = @transform_2, window_bounds = array<i64: 1, 768>}, {pipeline_mode = #tpu.pipeline_mode<synchronous>, transform_indices = @transform_3, window_bounds = array<i64: 2, 768>}]} {
    %c0 = arith.constant 0 : index
    %c0_0 = arith.constant 0 : index
    %0 = vector.load %arg1[%c0, %c0_0] : memref<2x768xbf16, #tpu.memory_space<vmem>>, vector<2x768xbf16>
    %c0_1 = arith.constant 0 : index
    %c0_2 = arith.constant 0 : index
    %1 = vector.load %arg2[%c0_1, %c0_2] : memref<768x768xbf16, #tpu.memory_space<vmem>>, vector<768x768xbf16>
    %c0_3 = arith.constant 0 : index
    %c0_4 = arith.constant 0 : index
    %2 = vector.load %arg3[%c0_3, %c0_4] : memref<1x768xf32, #tpu.memory_space<vmem>>, vector<1x768xf32>
    %cst = arith.constant dense<0.000000e+00> : vector<2x768xf32>
    %3 = tpu.matmul %0, %1, %cst {dimension_numbers = #tpu.dot_dimension_numbers<[1], [0], [0], [1], [0, 0, 1, 1], [], []>} : vector<2x768xbf16>, vector<768x768xbf16>, vector<2x768xf32> -> vector<2x768xf32>
    %4 = vector.broadcast %2 : vector<1x768xf32> to vector<2x768xf32>
    %5 = arith.addf %3, %4 : vector<2x768xf32>
    %6 = math.tanh %5 : vector<2x768xf32>
    %c767_i32 = arith.constant 767 : i32
    %7 = tpu.dynamic_rotate %6 by %c767_i32 dim 1 : vector<2x768xf32>, i32 -> vector<2x768xf32>
    %8 = arith.addf %6, %7 : vector<2x768xf32>
    %c766_i32 = arith.constant 766 : i32
    %9 = tpu.dynamic_rotate %6 by %c766_i32 dim 1 : vector<2x768xf32>, i32 -> vector<2x768xf32>
    %10 = arith.addf %8, %9 : vector<2x768xf32>
    %cst_5 = arith.constant 0.333333343 : f32
    %11 = vector.broadcast %cst_5 : f32 to vector<2x768xf32>
    %12 = arith.mulf %10, %11 : vector<2x768xf32>
    %13 = tpu.iota {dimensions = array<i32: 1>} : vector<2x768xi32>
    %c766_i32_6 = arith.constant 766 : i32
    %14 = vector.broadcast %c766_i32_6 : i32 to vector<2x768xi32>
    %15 = arith.cmpi slt, %13, %14 : vector<2x768xi32>
    %cst_7 = arith.constant 0.000000e+00 : f32
    %16 = vector.broadcast %cst_7 : f32 to vector<2x768xf32>
    %17 = arith.select %15, %12, %16 : vector<2x768xi1>, vector<2x768xf32>
    %c0_8 = arith.constant 0 : index
    %c0_9 = arith.constant 0 : index
    %18 = vector.load %arg4[%c0_8, %c0_9] : memref<2x768xf32, #tpu.memory_space<vmem>>, vector<2x768xf32>
    tpu.vector_store %arg4[%c0_8, %c0_9], %17 {strides = array<i32>} : memref<2x768xf32, #tpu.memory_space<vmem>>, vector<2x768xf32>,
    return
  }
  func.func @transform_0(%arg0: i32) -> (i32, i32) {
    %c0_i32 = arith.constant 0 : i32
    %c0_i32_0 = arith.constant 0 : i32
    %c0_i32_1 = arith.constant 0 : i32
    return %c0_i32, %c0_i32_0 : i32, i32
  }
  func.func @transform_1(%arg0: i32) -> (i32, i32) {
    %c0_i32 = arith.constant 0 : i32
    %c0_i32_0 = arith.constant 0 : i32
    %c0_i32_1 = arith.constant 0 : i32
    return %c0_i32, %c0_i32_0 : i32, i32
  }
  func.func @transform_2(%arg0: i32) -> (i32, i32) {
    %c0_i32 = arith.constant 0 : i32
    %c0_i32_0 = arith.constant 0 : i32
    %c0_i32_1 = arith.constant 0 : i32
    return %c0_i32, %c0_i32_0 : i32, i32
  }
  func.func @transform_3(%arg0: i32) -> (i32, i32) {
    %c0_i32 = arith.constant 0 : i32
    %c0_i32_0 = arith.constant 0 : i32
    %c0_i32_1 = arith.constant 0 : i32
    return %c0_i32, %c0_i32_0 : i32, i32
  }
}

</mosaic_0001>

<bundles_post_ra>
// kernel: tpu_custom_call.1
= control target key start
LH: loop header
LB: loop body
LE: loop exit
PB: predicated region body
PF: predicated region fallthrough
CT: control target
= control target key end

     0   :  { %8 = vsyncpa [#allocation3], 0  ;;  %s3395_s0 = inlined_call_operand.hbm [shape: bf16[2,768], index: 0, kind: input, shape index: {}]   ;;  %s3396_s1 = inlined_call_operand.hbm [shape: bf16[768,768], index: 1, kind: input, shape index: {}]   ;;  %s3397_s2 = inlined_call_operand.hbm [shape: f32[1,768], index: 2, kind: input, shape index: {}]   ;;  %s3398_s3 = inlined_call_operand.hbm [shape: f32[2,768], index: 3, kind: output, shape index: {}]  }
   0x1   :  { %9 = vsyncpa [#allocation6], 0 }
   0x2   :  { %10 = vsyncpa [#allocation4], 0  ;;  %s3234_s12 = smov [#allocation5]   ;;  %s3140_s16 = scalar_lea.hbm %s3396_s1, 36864 }
   0x3   :  { %s26_s13 = sshll.u32 %s3234_s12, 4  ;;  %p3141_p0 = scmp.ne.s32.totalorder %s3396_s1, %s3140_s16  ;;  %s27_s13 = int_to_ptr.vmem [resolvable:$true] %s26_s13 }
   0x4   :  { %p3144_p1 = scmp.lt.u32.totalorder %s3140_s16, %s3396_s1 }
   0x6   :  { %p3146_p2 = pnand %p3144_p1, %p3141_p0 }
   0x8   :  { %3149 = shalt.err (!%p3146_p2)
}
   0x9   :  { %s3150_s21 = scalar_lea.vmem %s27_s13, 36864  ;;  %p3155_p4 = scmp.lt.s32.totalorder %s27_s13, %s27_s13 }
   0xa   :  { %p3151_p3 = scmp.ne.s32.totalorder %s27_s13, %s3150_s21  ;;  %p3156_p5 = scmp.lt.s32.totalorder %s3150_s21, %s3150_s21 }
   0xc   :  { %p3157_p6 = por %p3156_p5, %p3155_p4 }
   0xe   :  { %p3158_p7 = pnand %p3157_p6, %p3151_p3 }
  0x10   :  { %3161 = shalt.err (!%p3158_p7)
}
  0x11   :  { %s3235_s22 = smov 384   ;;  %s3236_s23 = smov 24  }
  0x12   :  { %32 = dma.hbm_to_vmem [thread:$0]  %s3396_s1, 36864, %s27_s13, [#allocation6], %s3235_s22, %s3235_s22, %s3236_s23  }
  0x13   :  { %s3237_s26 = smov [#allocation2]   ;;  %s3238_s28 = smov [#allocation7]  }
  0x14   :  { %s17_s27 = sshll.u32 %s3237_s26, 4  ;;  %s39_s29 = sshll.u32 %s3238_s28, 4  ;;  %s18_s27 = int_to_ptr.vmem [resolvable:$true] %s17_s27  ;;  %s40_s29 = int_to_ptr.vmem [resolvable:$true] %s39_s29 }
  0x15   :  { %s3162_s5 = scalar_lea.hbm %s3395_s0, 96 }
  0x16   :  { %p3163_p8 = scmp.ne.s32.totalorder %s3395_s0, %s3162_s5  ;;  %p3166_p9 = scmp.lt.u32.totalorder %s3162_s5, %s3395_s0 }
  0x18   :  { %p3168_p10 = pnand %p3166_p9, %p3163_p8 }
  0x1a   :  { %3171 = shalt.err (!%p3168_p10)
}
  0x1b   :  { %s3172_s1 = scalar_lea.vmem %s18_s27, 96  ;;  %p3177_p12 = scmp.lt.s32.totalorder %s18_s27, %s18_s27 }
  0x1c   :  { %p3173_p11 = scmp.ne.s32.totalorder %s18_s27, %s3172_s1  ;;  %p3178_p13 = scmp.lt.s32.totalorder %s3172_s1, %s3172_s1 }
  0x1e   :  { %p3179_p0 = por %p3178_p13, %p3177_p12 }
  0x20   :  { %p3180_p1 = pnand %p3179_p0, %p3173_p11 }
  0x22   :  { %3183 = shalt.err (!%p3180_p1)
}
  0x23   :  { %20 = dma.hbm_to_vmem [thread:$0]  %s3395_s0, 96, %s18_s27, [#allocation3]  }
  0x24   :  { %s3184_s14 = scalar_lea.hbm %s3397_s2, 96 }
  0x25   :  { %p3185_p2 = scmp.ne.s32.totalorder %s3397_s2, %s3184_s14  ;;  %p3188_p3 = scmp.lt.u32.totalorder %s3184_s14, %s3397_s2 }
  0x27   :  { %p3190_p4 = pnand %p3188_p3, %p3185_p2 }
  0x29   :  { %3193 = shalt.err (!%p3190_p4)
}
  0x2a   :  { %s3194_s19 = scalar_lea.vmem %s40_s29, 96  ;;  %p3199_p6 = scmp.lt.s32.totalorder %s40_s29, %s40_s29 }
  0x2b   :  { %p3195_p5 = scmp.ne.s32.totalorder %s40_s29, %s3194_s19  ;;  %p3200_p7 = scmp.lt.s32.totalorder %s3194_s19, %s3194_s19 }
  0x2d   :  { %p3201_p8 = por %p3200_p7, %p3199_p6 }
  0x2f   :  { %p3202_p9 = pnand %p3201_p8, %p3195_p5 }
  0x31   :  { %3205 = shalt.err (!%p3202_p9)
}
  0x32   :  { %42 = dma.hbm_to_vmem [thread:$0]  %s3397_s2, 96, %s40_s29, [#allocation6]  }
  0x33   :  { %3228 = dma.done.wait [#allocation3], 96  }
  0x34   :  { %3229 = vsyncadd [#allocation3], 4294967200 }
  0x35   :  { %3230 = dma.done.wait [#allocation6], 36960  }
  0x36   :  { %3231 = vsyncadd [#allocation6], 4294930336  ;;  %v2695_v0 = vld [vmem:[#allocation5 + $0x4] ss:$24 sps:$4 sm:$0xff]   ;;  %v2699_v2 = vld [vmem:[#allocation5] ss:$24 sps:$4 sm:$0xff]   ;;  %v343_v36 = vlaneseq }
  0x37   :  { %v2697_v1 = vld [vmem:[#allocation5 + $0x304] ss:$24 sps:$4 sm:$0xff]   ;;  %1867 = vmatprep.subr.bf16.mxu1 %v2695_v0  ;;  %v2700_v3 = vld [vmem:[#allocation5 + $0x300] ss:$24 sps:$4 sm:$0xff]   ;;  %v2701_v4 = vld [vmem:[#allocation5 + $0x34] ss:$24 sps:$4 sm:$0xff]  }
  0x38   :  { %1908 = vmatprep.subr.bf16.mxu0 %v2697_v1  ;;  %1868 = vmatpush1.bf16.msra.mxu1 %v2699_v2  ;;  %v2703_v5 = vld [vmem:[#allocation5 + $0x334] ss:$24 sps:$4 sm:$0xff]   ;;  %v2705_v6 = vld [vmem:[#allocation5 + $0x30] ss:$24 sps:$4 sm:$0xff]   ;;  %v2707_v8 = vld [vmem:[#allocation5 + $0x64] ss:$24 sps:$4 sm:$0xff]  }
  0x39   :  { %1909 = vmatpush1.bf16.msra.mxu0 %v2700_v3  ;;  %1869 = vmatprep.subr.bf16.mxu1 %v2701_v4  ;;  %v2706_v7 = vld [vmem:[#allocation5 + $0x330] ss:$24 sps:$4 sm:$0xff]   ;;  %v2709_v9 = vld [vmem:[#allocation5 + $0x364] ss:$24 sps:$4 sm:$0xff]   ;;  %v2711_v10 = vld [vmem:[#allocation5 + $0x60] ss:$24 sps:$4 sm:$0xff]  }
  0x3a   :  { %1910 = vmatprep.subr.bf16.mxu0 %v2703_v5  ;;  %v2712_v11 = vld [vmem:[#allocation5 + $0x360] ss:$24 sps:$4 sm:$0xff]   ;;  %v2713_v12 = vld [vmem:[#allocation5 + $0x94] ss:$24 sps:$4 sm:$0xff]   ;;  %v2717_v14 = vld [vmem:[#allocation5 + $0x90] ss:$24 sps:$4 sm:$0xff]  }
  0x3b   :  { %v2715_v13 = vld [vmem:[#allocation5 + $0x394] ss:$24 sps:$4 sm:$0xff]   ;;  %v2718_v15 = vld [vmem:[#allocation5 + $0x390] ss:$24 sps:$4 sm:$0xff]   ;;  %v2719_v16 = vld [vmem:[#allocation5 + $0xc4] ss:$24 sps:$4 sm:$0xff]  }
  0x3c   :  { %1870 = vmatpush1.bf16.msra.mxu1 %v2705_v6  ;;  %v2721_v17 = vld [vmem:[#allocation5 + $0x3c4] ss:$24 sps:$4 sm:$0xff]   ;;  %v2723_v18 = vld [vmem:[#allocation5 + $0xc0] ss:$24 sps:$4 sm:$0xff]   ;;  %v2725_v20 = vld [vmem:[#allocation5 + $0xf4] ss:$24 sps:$4 sm:$0xff]  }
  0x3d   :  { %1911 = vmatpush1.bf16.msra.mxu0 %v2706_v7  ;;  %1871 = vmatprep.subr.bf16.mxu1 %v2707_v8  ;;  %v2724_v19 = vld [vmem:[#allocation5 + $0x3c0] ss:$24 sps:$4 sm:$0xff]   ;;  %v2727_v21 = vld [vmem:[#allocation5 + $0x3f4] ss:$24 sps:$4 sm:$0xff]   ;;  %v2729_v22 = vld [vmem:[#allocation5 + $0xf0] ss:$24 sps:$4 sm:$0xff]  }
  0x3e   :  { %1912 = vmatprep.subr.bf16.mxu0 %v2709_v9  ;;  %v2730_v23 = vld [vmem:[#allocation5 + $0x3f0] ss:$24 sps:$4 sm:$0xff]   ;;  %v2731_v24 = vld [vmem:[#allocation5 + $0x124] ss:$24 sps:$4 sm:$0xff]   ;;  %v2735_v26 = vld [vmem:[#allocation5 + $0x120] ss:$24 sps:$4 sm:$0xff]  }
  0x3f   :  { %v2733_v25 = vld [vmem:[#allocation5 + $0x424] ss:$24 sps:$4 sm:$0xff]   ;;  %v2736_v27 = vld [vmem:[#allocation5 + $0x420] ss:$24 sps:$4 sm:$0xff]   ;;  %v2737_v28 = vld [vmem:[#allocation5 + $0x154] ss:$24 sps:$4 sm:$0xff]  }
  0x40   :  { %1872 = vmatpush1.bf16.msra.mxu1 %v2711_v10  ;;  %v2739_v29 = vld [vmem:[#allocation5 + $0x454] ss:$24 sps:$4 sm:$0xff]   ;;  %v2741_v30 = vld [vmem:[#allocation5 + $0x150] ss:$24 sps:$4 sm:$0xff]   ;;  %v2743_v32 = vld [vmem:[#allocation5 + $0x184] ss:$24 sps:$4 sm:$0xff]  }
  0x41   :  { %1913 = vmatpush1.bf16.msra.mxu0 %v2712_v11  ;;  %1873 = vmatprep.subr.bf16.mxu1 %v2713_v12  ;;  %v2742_v31 = vld [vmem:[#allocation5 + $0x450] ss:$24 sps:$4 sm:$0xff]   ;;  %v2745_v33 = vld [vmem:[#allocation5 + $0x484] ss:$24 sps:$4 sm:$0xff]   ;;  %v2747_v34 = vld [vmem:[#allocation5 + $0x180] ss:$24 sps:$4 sm:$0xff]  }
  0x42   :  { %1914 = vmatprep.subr.bf16.mxu0 %v2715_v13  ;;  %v2748_v35 = vld [vmem:[#allocation5 + $0x480] ss:$24 sps:$4 sm:$0xff]   ;;  %v3239_v37 = vmov 1966171168   ;;  %v2749_v39 = vld [vmem:[#allocation5 + $0x1b4] ss:$24 sps:$4 sm:$0xff]  }
  0x43   :  { %v376_v38 = vunpack.c.l.s4 %v3239_v37  ;;  %v2751_v40 = vld [vmem:[#allocation5 + $0x4b4] ss:$24 sps:$4 sm:$0xff]   ;;  %v2753_v41 = vld [vmem:[#allocation5 + $0x1b0] ss:$24 sps:$4 sm:$0xff]   ;;  %v3301_v42 = vshrl.u32 %v343_v36, 7  ;;  %s3240_s2 = smov 126  }
  0x44   :  { %1874 = vmatpush1.bf16.msra.mxu1 %v2717_v14  ;;  %v2754_v44 = vld [vmem:[#allocation5 + $0x4b0] ss:$24 sps:$4 sm:$0xff]   ;;  %v2755_v45 = vld [vmem:[#allocation5 + $0x1e4] ss:$24 sps:$4 sm:$0xff]   ;;  %v2759_v47 = vld [vmem:[#allocation5 + $0x1e0] ss:$24 sps:$4 sm:$0xff]  }
  0x45   :  { %1915 = vmatpush1.bf16.msra.mxu0 %v2718_v15  ;;  %1875 = vmatprep.subr.bf16.mxu1 %v2719_v16  ;;  %v377_v43 = vunpack.c.0.s8 %v376_v38  ;;  %v2757_v46 = vld [vmem:[#allocation5 + $0x4e4] ss:$24 sps:$4 sm:$0xff]   ;;  %v2760_v48 = vld [vmem:[#allocation5 + $0x4e0] ss:$24 sps:$4 sm:$0xff]   ;;  %v2761_v50 = vld [vmem:[#allocation5 + $0x214] ss:$24 sps:$4 sm:$0xff]  }
  0x46   :  { %1916 = vmatprep.subr.bf16.mxu0 %v2721_v17  ;;  %v2763_v51 = vld [vmem:[#allocation5 + $0x514] ss:$24 sps:$4 sm:$0xff]   ;;  %v52_v52 = vld [vmem:[#allocation2] sm:$0x3f]  ;;  %v2765_v53 = vld [vmem:[#allocation5 + $0x210] ss:$24 sps:$4 sm:$0xff]  }
  0x47   :  { %v3304_v49 = vsub.s32 %v377_v43, %v3301_v42  ;;  %v374_v55 = vcombine.high %v52_v52, %v52_v52  ;;  %v2766_v56 = vld [vmem:[#allocation5 + $0x510] ss:$24 sps:$4 sm:$0xff]   ;;  %v2767_v57 = vld [vmem:[#allocation5 + $0x244] ss:$24 sps:$4 sm:$0xff]   ;;  %v2771_v61 = vld [vmem:[#allocation5 + $0x240] ss:$24 sps:$4 sm:$0xff]  }
  0x48   :  { %1876 = vmatpush1.bf16.msra.mxu1 %v2723_v18  ;;  %v2769_v58 = vld [vmem:[#allocation5 + $0x544] ss:$24 sps:$4 sm:$0xff]   ;;  %v2772_v0 = vld [vmem:[#allocation5 + $0x540] ss:$24 sps:$4 sm:$0xff]   ;;  %v2773_v1 = vld [vmem:[#allocation5 + $0x274] ss:$24 sps:$4 sm:$0xff]  }
  0x49   :  { %1917 = vmatpush1.bf16.msra.mxu0 %v2724_v19  ;;  %1877 = vmatprep.subr.bf16.mxu1 %v2725_v20  ;;  %v381_v54 = vrot.slane %v52_v52, %v3304_v49  ;;  %v388_v60 = vrot.slane %v374_v55, %v3304_v49  ;;  %v2775_v2 = vld [vmem:[#allocation5 + $0x574] ss:$24 sps:$4 sm:$0xff]   ;;  %v2777_v4 = vld [vmem:[#allocation5 + $0x270] ss:$24 sps:$4 sm:$0xff]   ;;  %v2779_v6 = vld [vmem:[#allocation5 + $0x2a4] ss:$24 sps:$4 sm:$0xff]  }
  0x4a   :  { %1918 = vmatprep.subr.bf16.mxu0 %v2727_v21  ;;  %v2778_v5 = vld [vmem:[#allocation5 + $0x570] ss:$24 sps:$4 sm:$0xff]   ;;  %v2781_v7 = vld [vmem:[#allocation5 + $0x5a4] ss:$24 sps:$4 sm:$0xff]   ;;  %v2783_v8 = vld [vmem:[#allocation5 + $0x2a0] ss:$24 sps:$4 sm:$0xff]  }
  0x4b   :  { %v389_v59 = vcombine.high %v381_v54, %v381_v54  ;;  %v3312_v63 = vrot.slane %v388_v60, %v3304_v49  ;;  %v2784_v9 = vld [vmem:[#allocation5 + $0x5a0] ss:$24 sps:$4 sm:$0xff]   ;;  %v2785_v10 = vld [vmem:[#allocation5 + $0x2d4] ss:$24 sps:$4 sm:$0xff]   ;;  %v2789_v12 = vld [vmem:[#allocation5 + $0x2d0] ss:$24 sps:$4 sm:$0xff]   ;;  %v3321_v13 = vrot.slane %v381_v54, %v3304_v49  ;;  %v390_v17 = vcombine.high %v388_v60, %v388_v60 }
  0x4c   :  { %1878 = vmatpush1.bf16.msra.mxu1 %v2729_v22  ;;  %v2787_v11 = vld [vmem:[#allocation5 + $0x5d4] ss:$24 sps:$4 sm:$0xff]   ;;  %v2790_v14 = vld [vmem:[#allocation5 + $0x5d0] ss:$24 sps:$4 sm:$0xff]   ;;  %v2793_v15 = vld [vmem:[#allocation5 + $0x604] ss:$24 sps:$4 sm:$0xff]  }
  0x4d   :  { %1919 = vmatpush1.bf16.msra.mxu0 %v2730_v23  ;;  %1879 = vmatprep.subr.bf16.mxu1 %v2731_v24  ;;  %v3309_v62 = vrot.slane %v389_v59, %v3304_v49  ;;  %v2796_v16 = vld [vmem:[#allocation5 + $0xc] ss:$24 sps:$4 sm:$0xff]   ;;  %v2791_v18 = vld [vmem:[#allocation5 + $0x600] ss:$24 sps:$4 sm:$0xff]   ;;  %v3325_v19 = vcombine.high %v3321_v13, %v3321_v13  ;;  %v2802_v22 = vld [vmem:[#allocation5 + $0x3c] ss:$24 sps:$4 sm:$0xff]   ;;  %v3328_v23 = vrot.slane %v390_v17, %v3304_v49 }
  0x4e   :  { %1920 = vmatprep.subr.bf16.mxu0 %v2733_v25  ;;  %v2794_v20 = vld [vmem:[#allocation5 + $0x8] ss:$24 sps:$4 sm:$0xff]   ;;  %v2799_v21 = vld [vmem:[#allocation5 + $0x634] ss:$24 sps:$4 sm:$0xff]   ;;  %v2800_v25 = vld [vmem:[#allocation5 + $0x38] ss:$24 sps:$4 sm:$0xff]  }
  0x4f   :  { %v3316_v3 = vcombine.high %v3309_v62, %v3309_v62  ;;  %1899 = vmatprep.mubr.bf16.mxu1 %v3309_v62  ;;  %v2797_v24 = vld [vmem:[#allocation5 + $0x630] ss:$24 sps:$4 sm:$0xff]   ;;  %v2815_v37 = vld [vmem:[#allocation5 + $0x6c0] ss:$24 sps:$4 sm:$0xff]   ;;  %v2838_v49 = vld [vmem:[#allocation5 + $0x15c] ss:$24 sps:$4 sm:$0xff]  }
  0x50   :  { %1880 = vmatpush1.bf16.msra.mxu1 %v2735_v26  ;;  %v2805_v26 = vld [vmem:[#allocation5 + $0x664] ss:$24 sps:$4 sm:$0xff]   ;;  %v2818_v38 = vld [vmem:[#allocation5 + $0xc8] ss:$24 sps:$4 sm:$0xff]   ;;  %v2824_v43 = vld [vmem:[#allocation5 + $0xf8] ss:$24 sps:$4 sm:$0xff]  }
  0x51   :  { %1921 = vmatpush1.bf16.msra.mxu0 %v2736_v27  ;;  %1881 = vmatprep.subr.bf16.mxu1 %v2737_v28  ;;  %v2808_v27 = vld [vmem:[#allocation5 + $0x6c] ss:$24 sps:$4 sm:$0xff]   ;;  %v2803_v28 = vld [vmem:[#allocation5 + $0x660] ss:$24 sps:$4 sm:$0xff]   ;;  %s3241_s21 = smov 127   ;;  %s3243_s22 = smov [#allocation8]  }
  0x52   :  { %1922 = vmatprep.subr.bf16.mxu0 %v2739_v29  ;;  %1940 = vmatprep.mubr.bf16.mxu0 %v3316_v3  ;;  %v2806_v29 = vld [vmem:[#allocation5 + $0x68] ss:$24 sps:$4 sm:$0xff]   ;;  %v2841_v52 = vld [vmem:[#allocation5 + $0x784] ss:$24 sps:$4 sm:$0xff]   ;;  %v2848_v59 = vld [vmem:[#allocation5 + $0x1b8] ss:$24 sps:$4 sm:$0xff]  }
  0x53   :  { %v2839_v54 = vld [vmem:[#allocation5 + $0x780] ss:$24 sps:$4 sm:$0xff]   ;;  %v2853_v60 = vld [vmem:[#allocation5 + $0x7e4] ss:$24 sps:$4 sm:$0xff]   ;;  %s2358_s23 = sshll.u32 %s3243_s22, 4  ;;  %s2359_s23 = int_to_ptr.vmem [resolvable:$true] %s2358_s23 }
  0x54   :  { %1882 = vmatpush1.bf16.msra.mxu1 %v2741_v30  ;;  %v2811_v30 = vld [vmem:[#allocation5 + $0x694] ss:$24 sps:$4 sm:$0xff]   ;;  %v2842_v55 = vld [vmem:[#allocation5 + $0x188] ss:$24 sps:$4 sm:$0xff]   ;;  %s3206_s24 = scalar_lea.vmem %s2359_s23, 192  ;;  %p3211_p11 = scmp.lt.s32.totalorder %s2359_s23, %s2359_s23 }
  0x55   :  { %1923 = vmatpush1.bf16.msra.mxu0 %v2742_v31  ;;  %1883 = vmatprep.subr.bf16.mxu1 %v2743_v32  ;;  %v2814_v31 = vld [vmem:[#allocation5 + $0x9c] ss:$24 sps:$4 sm:$0xff]   ;;  %v2809_v32 = vld [vmem:[#allocation5 + $0x690] ss:$24 sps:$4 sm:$0xff]   ;;  %v2880_v17 = vld [vmem:[#allocation5 + $0x2ac] ss:$24 sps:$4 sm:$0xff]   ;;  %p3207_p10 = scmp.ne.s32.totalorder %s2359_s23, %s3206_s24  ;;  %p3212_p12 = scmp.lt.s32.totalorder %s3206_s24, %s3206_s24 }
  0x56   :  { %1924 = vmatprep.subr.bf16.mxu0 %v2745_v33  ;;  %v2812_v33 = vld [vmem:[#allocation5 + $0x98] ss:$24 sps:$4 sm:$0xff]  }
  0x57   :  { %p3213_p13 = por %p3212_p12, %p3211_p11 }
  0x58   :  { %1884 = vmatpush1.bf16.msra.mxu1 %v2747_v34  ;;  %v2817_v34 = vld [vmem:[#allocation5 + $0x6c4] ss:$24 sps:$4 sm:$0xff]  }
  0x59   :  { %1925 = vmatpush1.bf16.msra.mxu0 %v2748_v35  ;;  %1885 = vmatprep.subr.bf16.mxu1 %v2749_v39  ;;  %v2820_v35 = vld [vmem:[#allocation5 + $0xcc] ss:$24 sps:$4 sm:$0xff]   ;;  %p3214_p0 = pnand %p3213_p13, %p3207_p10 }
  0x5a   :  { %1926 = vmatprep.subr.bf16.mxu0 %v2751_v40  ;;  %v2823_v39 = vld [vmem:[#allocation5 + $0x6f4] ss:$24 sps:$4 sm:$0xff]  }
  0x5b   :  { %v2826_v40 = vld [vmem:[#allocation5 + $0xfc] ss:$24 sps:$4 sm:$0xff]  }
  0x5c   :  { %1886 = vmatpush1.bf16.msra.mxu1 %v2753_v41  ;;  %v2821_v41 = vld [vmem:[#allocation5 + $0x6f0] ss:$24 sps:$4 sm:$0xff]  }
  0x5d   :  { %1927 = vmatpush1.bf16.msra.mxu0 %v2754_v44  ;;  %1887 = vmatprep.subr.bf16.mxu1 %v2755_v45  ;;  %v2829_v44 = vld [vmem:[#allocation5 + $0x724] ss:$24 sps:$4 sm:$0xff]  }
  0x5e   :  { %1928 = vmatprep.subr.bf16.mxu0 %v2757_v46  ;;  %v2832_v45 = vld [vmem:[#allocation5 + $0x12c] ss:$24 sps:$4 sm:$0xff]   ;;  %v2827_v46 = vld [vmem:[#allocation5 + $0x720] ss:$24 sps:$4 sm:$0xff]  }
  0x60   :  { %1888 = vmatpush1.bf16.msra.mxu1 %v2759_v47  ;;  %v2830_v47 = vld [vmem:[#allocation5 + $0x128] ss:$24 sps:$4 sm:$0xff]  }
  0x61   :  { %1929 = vmatpush1.bf16.msra.mxu0 %v2760_v48  ;;  %1889 = vmatprep.subr.bf16.mxu1 %v2761_v50  ;;  %v2835_v48 = vld [vmem:[#allocation5 + $0x754] ss:$24 sps:$4 sm:$0xff]   ;;  %v2833_v50 = vld [vmem:[#allocation5 + $0x750] ss:$24 sps:$4 sm:$0xff]  }
  0x62   :  { %1930 = vmatprep.subr.bf16.mxu0 %v2763_v51  ;;  %v2836_v51 = vld [vmem:[#allocation5 + $0x158] ss:$24 sps:$4 sm:$0xff]  }
  0x64   :  { %1890 = vmatpush1.bf16.msra.mxu1 %v2765_v53  ;;  %v2844_v53 = vld [vmem:[#allocation5 + $0x18c] ss:$24 sps:$4 sm:$0xff]  }
  0x65   :  { %1931 = vmatpush1.bf16.msra.mxu0 %v2766_v56  ;;  %1891 = vmatprep.subr.bf16.mxu1 %v2767_v57  ;;  %v2847_v56 = vld [vmem:[#allocation5 + $0x7b4] ss:$24 sps:$4 sm:$0xff]  }
  0x66   :  { %1932 = vmatprep.subr.bf16.mxu0 %v2769_v58  ;;  %v2850_v57 = vld [vmem:[#allocation5 + $0x1bc] ss:$24 sps:$4 sm:$0xff]   ;;  %v2845_v58 = vld [vmem:[#allocation5 + $0x7b0] ss:$24 sps:$4 sm:$0xff]  }
  0x68   :  { %1892 = vmatpush1.bf16.msra.mxu1 %v2771_v61  ;;  %v2856_v61 = vld [vmem:[#allocation5 + $0x1ec] ss:$24 sps:$4 sm:$0xff]  }
  0x69   :  { %1933 = vmatpush1.bf16.msra.mxu0 %v2772_v0  ;;  %1893 = vmatprep.subr.bf16.mxu1 %v2773_v1  ;;  %v2851_v0 = vld [vmem:[#allocation5 + $0x7e0] ss:$24 sps:$4 sm:$0xff]  }
  0x6a   :  { %1934 = vmatprep.subr.bf16.mxu0 %v2775_v2  ;;  %v2854_v1 = vld [vmem:[#allocation5 + $0x1e8] ss:$24 sps:$4 sm:$0xff]   ;;  %v2859_v2 = vld [vmem:[#allocation5 + $0x814] ss:$24 sps:$4 sm:$0xff]  }
  0x6c   :  { %1894 = vmatpush1.bf16.msra.mxu1 %v2777_v4  ;;  %v2862_v4 = vld [vmem:[#allocation5 + $0x21c] ss:$24 sps:$4 sm:$0xff]  }
  0x6d   :  { %1935 = vmatpush1.bf16.msra.mxu0 %v2778_v5  ;;  %1895 = vmatprep.subr.bf16.mxu1 %v2779_v6  ;;  %v2857_v5 = vld [vmem:[#allocation5 + $0x810] ss:$24 sps:$4 sm:$0xff]  }
  0x6e   :  { %1936 = vmatprep.subr.bf16.mxu0 %v2781_v7  ;;  %v2860_v6 = vld [vmem:[#allocation5 + $0x218] ss:$24 sps:$4 sm:$0xff]   ;;  %v2865_v7 = vld [vmem:[#allocation5 + $0x844] ss:$24 sps:$4 sm:$0xff]  }
  0x70   :  { %1896 = vmatpush1.bf16.msra.mxu1 %v2783_v8  ;;  %v2868_v8 = vld [vmem:[#allocation5 + $0x24c] ss:$24 sps:$4 sm:$0xff]  }
  0x71   :  { %1937 = vmatpush1.bf16.msra.mxu0 %v2784_v9  ;;  %1897 = vmatprep.subr.bf16.mxu1 %v2785_v10  ;;  %v2863_v9 = vld [vmem:[#allocation5 + $0x840] ss:$24 sps:$4 sm:$0xff]  }
  0x72   :  { %1938 = vmatprep.subr.bf16.mxu0 %v2787_v11  ;;  %v2866_v10 = vld [vmem:[#allocation5 + $0x248] ss:$24 sps:$4 sm:$0xff]   ;;  %v2871_v11 = vld [vmem:[#allocation5 + $0x874] ss:$24 sps:$4 sm:$0xff]  }
  0x74   :  { %1898 = vmatpush1.bf16.msra.mxu1 %v2789_v12  ;;  %v2874_v12 = vld [vmem:[#allocation5 + $0x27c] ss:$24 sps:$4 sm:$0xff]  }
  0x75   :  { %1939 = vmatpush1.bf16.msra.mxu0 %v2790_v14  ;;  %1990 = vmatprep.subr.bf16.mxu1 %v2796_v16  ;;  %v2869_v14 = vld [vmem:[#allocation5 + $0x870] ss:$24 sps:$4 sm:$0xff]   ;;  %v2877_v16 = vld [vmem:[#allocation5 + $0x8a4] ss:$24 sps:$4 sm:$0xff]  }
  0x76   :  { %1949 = vmatprep.subr.bf16.mxu0 %v2793_v15  ;;  %v2872_v15 = vld [vmem:[#allocation5 + $0x278] ss:$24 sps:$4 sm:$0xff]  }
  0x77   :  { %1900 = vmatmul.mubr.bf16.vlgmr.msra.gmra.mrb[0].mxu1 %v3321_v13 }
  0x78   :  { %1941 = vmatmul.mubr.bf16.vlgmr.msra.gmra.mrb[0].mxu0 %v3325_v19  ;;  %1991 = vmatpush1.bf16.msra.mxu1 %v2794_v20  ;;  %v2878_v20 = vld [vmem:[#allocation5 + $0x2a8] ss:$24 sps:$4 sm:$0xff]  }
  0x79   :  { %1950 = vmatpush1.bf16.msra.mxu0 %v2791_v18  ;;  %1992 = vmatprep.subr.bf16.mxu1 %v2802_v22  ;;  %v2875_v18 = vld [vmem:[#allocation5 + $0x8a0] ss:$24 sps:$4 sm:$0xff]   ;;  %v2886_v22 = vld [vmem:[#allocation5 + $0x2dc] ss:$24 sps:$4 sm:$0xff]  }
  0x7a   :  { %1951 = vmatprep.subr.bf16.mxu0 %v2799_v21  ;;  %1981 = vmatprep.mubr.bf16.mxu0 %v3328_v23  ;;  %v2883_v21 = vld [vmem:[#allocation5 + $0x8d4] ss:$24 sps:$4 sm:$0xff]  }
  0x7b   :  { %2022 = vmatprep.mubr.bf16.mxu1 %v3309_v62 }
  0x7c   :  { %1993 = vmatpush1.bf16.msra.mxu1 %v2800_v25  ;;  %v2884_v25 = vld [vmem:[#allocation5 + $0x2d8] ss:$24 sps:$4 sm:$0xff]  }
  0x7d   :  { %1952 = vmatpush1.bf16.msra.mxu0 %v2797_v24  ;;  %1994 = vmatprep.subr.bf16.mxu1 %v2808_v27  ;;  %v2881_v24 = vld [vmem:[#allocation5 + $0x8d0] ss:$24 sps:$4 sm:$0xff]   ;;  %v2893_v27 = vld [vmem:[#allocation5 + $0x14] ss:$24 sps:$4 sm:$0xff]  }
  0x7e   :  { %1953 = vmatprep.subr.bf16.mxu0 %v2805_v26  ;;  %v2890_v26 = vld [vmem:[#allocation5 + $0x30c] ss:$24 sps:$4 sm:$0xff]  }
  0x80   :  { %1995 = vmatpush1.bf16.msra.mxu1 %v2806_v29  ;;  %v2891_v29 = vld [vmem:[#allocation5 + $0x10] ss:$24 sps:$4 sm:$0xff]  }
  0x81   :  { %1954 = vmatpush1.bf16.msra.mxu0 %v2803_v28  ;;  %1996 = vmatprep.subr.bf16.mxu1 %v2814_v31  ;;  %v2888_v28 = vld [vmem:[#allocation5 + $0x308] ss:$24 sps:$4 sm:$0xff]   ;;  %v2899_v31 = vld [vmem:[#allocation5 + $0x44] ss:$24 sps:$4 sm:$0xff]  }
  0x82   :  { %1955 = vmatprep.subr.bf16.mxu0 %v2811_v30  ;;  %v2896_v30 = vld [vmem:[#allocation5 + $0x33c] ss:$24 sps:$4 sm:$0xff]  }
  0x84   :  { %1997 = vmatpush1.bf16.msra.mxu1 %v2812_v33  ;;  %v2897_v33 = vld [vmem:[#allocation5 + $0x40] ss:$24 sps:$4 sm:$0xff]  }
  0x85   :  { %1956 = vmatpush1.bf16.msra.mxu0 %v2809_v32  ;;  %1998 = vmatprep.subr.bf16.mxu1 %v2820_v35  ;;  %v2894_v32 = vld [vmem:[#allocation5 + $0x338] ss:$24 sps:$4 sm:$0xff]   ;;  %v2905_v35 = vld [vmem:[#allocation5 + $0x74] ss:$24 sps:$4 sm:$0xff]  }
  0x86   :  { %1957 = vmatprep.subr.bf16.mxu0 %v2817_v34  ;;  %v2902_v34 = vld [vmem:[#allocation5 + $0x36c] ss:$24 sps:$4 sm:$0xff]  }
  0x88   :  { %1999 = vmatpush1.bf16.msra.mxu1 %v2818_v38  ;;  %v2903_v38 = vld [vmem:[#allocation5 + $0x70] ss:$24 sps:$4 sm:$0xff]  }
  0x89   :  { %1958 = vmatpush1.bf16.msra.mxu0 %v2815_v37  ;;  %2000 = vmatprep.subr.bf16.mxu1 %v2826_v40  ;;  %v2900_v37 = vld [vmem:[#allocation5 + $0x368] ss:$24 sps:$4 sm:$0xff]   ;;  %v2911_v40 = vld [vmem:[#allocation5 + $0xa4] ss:$24 sps:$4 sm:$0xff]  }
  0x8a   :  { %1959 = vmatprep.subr.bf16.mxu0 %v2823_v39  ;;  %v2908_v39 = vld [vmem:[#allocation5 + $0x39c] ss:$24 sps:$4 sm:$0xff]  }
  0x8c   :  { %2001 = vmatpush1.bf16.msra.mxu1 %v2824_v43  ;;  %v2909_v43 = vld [vmem:[#allocation5 + $0xa0] ss:$24 sps:$4 sm:$0xff]  }
  0x8d   :  { %1960 = vmatpush1.bf16.msra.mxu0 %v2821_v41  ;;  %2002 = vmatprep.subr.bf16.mxu1 %v2832_v45  ;;  %v2906_v41 = vld [vmem:[#allocation5 + $0x398] ss:$24 sps:$4 sm:$0xff]   ;;  %v2917_v45 = vld [vmem:[#allocation5 + $0xd4] ss:$24 sps:$4 sm:$0xff]  }
  0x8e   :  { %1961 = vmatprep.subr.bf16.mxu0 %v2829_v44  ;;  %v2914_v44 = vld [vmem:[#allocation5 + $0x3cc] ss:$24 sps:$4 sm:$0xff]  }
  0x90   :  { %2003 = vmatpush1.bf16.msra.mxu1 %v2830_v47  ;;  %v2920_v47 = vld [vmem:[#allocation5 + $0x3fc] ss:$24 sps:$4 sm:$0xff]  }
  0x91   :  { %1962 = vmatpush1.bf16.msra.mxu0 %v2827_v46  ;;  %2004 = vmatprep.subr.bf16.mxu1 %v2838_v49  ;;  %v2912_v46 = vld [vmem:[#allocation5 + $0x3c8] ss:$24 sps:$4 sm:$0xff]   ;;  %v2918_v49 = vld [vmem:[#allocation5 + $0x3f8] ss:$24 sps:$4 sm:$0xff]  }
  0x92   :  { %1963 = vmatprep.subr.bf16.mxu0 %v2835_v48  ;;  %v2923_v48 = vld [vmem:[#allocation5 + $0x104] ss:$24 sps:$4 sm:$0xff]  }
  0x94   :  { %2005 = vmatpush1.bf16.msra.mxu1 %v2836_v51  ;;  %v2926_v51 = vld [vmem:[#allocation5 + $0x42c] ss:$24 sps:$4 sm:$0xff]  }
  0x95   :  { %1964 = vmatpush1.bf16.msra.mxu0 %v2833_v50  ;;  %2006 = vmatprep.subr.bf16.mxu1 %v2844_v53  ;;  %v2921_v50 = vld [vmem:[#allocation5 + $0x100] ss:$24 sps:$4 sm:$0xff]  }
  0x96   :  { %1965 = vmatprep.subr.bf16.mxu0 %v2841_v52  ;;  %v2929_v52 = vld [vmem:[#allocation5 + $0x134] ss:$24 sps:$4 sm:$0xff]   ;;  %v2924_v53 = vld [vmem:[#allocation5 + $0x428] ss:$24 sps:$4 sm:$0xff]  }
  0x98   :  { %2007 = vmatpush1.bf16.msra.mxu1 %v2842_v55  ;;  %v2932_v55 = vld [vmem:[#allocation5 + $0x45c] ss:$24 sps:$4 sm:$0xff]  }
  0x99   :  { %1966 = vmatpush1.bf16.msra.mxu0 %v2839_v54  ;;  %2008 = vmatprep.subr.bf16.mxu1 %v2850_v57  ;;  %v2927_v54 = vld [vmem:[#allocation5 + $0x130] ss:$24 sps:$4 sm:$0xff]  }
  0x9a   :  { %1967 = vmatprep.subr.bf16.mxu0 %v2847_v56  ;;  %v2935_v56 = vld [vmem:[#allocation5 + $0x164] ss:$24 sps:$4 sm:$0xff]   ;;  %v2930_v57 = vld [vmem:[#allocation5 + $0x458] ss:$24 sps:$4 sm:$0xff]  }
  0x9c   :  { %2009 = vmatpush1.bf16.msra.mxu1 %v2848_v59  ;;  %v2938_v59 = vld [vmem:[#allocation5 + $0x48c] ss:$24 sps:$4 sm:$0xff]  }
  0x9d   :  { %1968 = vmatpush1.bf16.msra.mxu0 %v2845_v58  ;;  %2010 = vmatprep.subr.bf16.mxu1 %v2856_v61  ;;  %v2933_v58 = vld [vmem:[#allocation5 + $0x160] ss:$24 sps:$4 sm:$0xff]  }
  0x9e   :  { %1969 = vmatprep.subr.bf16.mxu0 %v2853_v60  ;;  %v2941_v60 = vld [vmem:[#allocation5 + $0x194] ss:$24 sps:$4 sm:$0xff]   ;;  %v2936_v61 = vld [vmem:[#allocation5 + $0x488] ss:$24 sps:$4 sm:$0xff]  }
  0xa0   :  { %2011 = vmatpush1.bf16.msra.mxu1 %v2854_v1  ;;  %v2944_v1 = vld [vmem:[#allocation5 + $0x4bc] ss:$24 sps:$4 sm:$0xff]  }
  0xa1   :  { %1970 = vmatpush1.bf16.msra.mxu0 %v2851_v0  ;;  %2012 = vmatprep.subr.bf16.mxu1 %v2862_v4  ;;  %v2939_v0 = vld [vmem:[#allocation5 + $0x190] ss:$24 sps:$4 sm:$0xff]  }
  0xa2   :  { %1971 = vmatprep.subr.bf16.mxu0 %v2859_v2  ;;  %v2947_v2 = vld [vmem:[#allocation5 + $0x1c4] ss:$24 sps:$4 sm:$0xff]   ;;  %v2942_v4 = vld [vmem:[#allocation5 + $0x4b8] ss:$24 sps:$4 sm:$0xff]  }
  0xa4   :  { %2013 = vmatpush1.bf16.msra.mxu1 %v2860_v6  ;;  %v2950_v6 = vld [vmem:[#allocation5 + $0x4ec] ss:$24 sps:$4 sm:$0xff]  }
  0xa5   :  { %1972 = vmatpush1.bf16.msra.mxu0 %v2857_v5  ;;  %2014 = vmatprep.subr.bf16.mxu1 %v2868_v8  ;;  %v2945_v5 = vld [vmem:[#allocation5 + $0x1c0] ss:$24 sps:$4 sm:$0xff]  }
  0xa6   :  { %1973 = vmatprep.subr.bf16.mxu0 %v2865_v7  ;;  %v2953_v7 = vld [vmem:[#allocation5 + $0x1f4] ss:$24 sps:$4 sm:$0xff]   ;;  %v2948_v8 = vld [vmem:[#allocation5 + $0x4e8] ss:$24 sps:$4 sm:$0xff]  }
  0xa8   :  { %2015 = vmatpush1.bf16.msra.mxu1 %v2866_v10  ;;  %v2956_v10 = vld [vmem:[#allocation5 + $0x51c] ss:$24 sps:$4 sm:$0xff]  }
  0xa9   :  { %1974 = vmatpush1.bf16.msra.mxu0 %v2863_v9  ;;  %2016 = vmatprep.subr.bf16.mxu1 %v2874_v12  ;;  %v2951_v9 = vld [vmem:[#allocation5 + $0x1f0] ss:$24 sps:$4 sm:$0xff]  }
  0xaa   :  { %1975 = vmatprep.subr.bf16.mxu0 %v2871_v11  ;;  %v2959_v11 = vld [vmem:[#allocation5 + $0x224] ss:$24 sps:$4 sm:$0xff]   ;;  %v2954_v12 = vld [vmem:[#allocation5 + $0x518] ss:$24 sps:$4 sm:$0xff]  }
  0xac   :  { %2017 = vmatpush1.bf16.msra.mxu1 %v2872_v15  ;;  %v2962_v15 = vld [vmem:[#allocation5 + $0x54c] ss:$24 sps:$4 sm:$0xff]  }
  0xad   :  { %1976 = vmatpush1.bf16.msra.mxu0 %v2869_v14  ;;  %2018 = vmatprep.subr.bf16.mxu1 %v2880_v17  ;;  %v2957_v14 = vld [vmem:[#allocation5 + $0x220] ss:$24 sps:$4 sm:$0xff]  }
  0xae   :  { %1977 = vmatprep.subr.bf16.mxu0 %v2877_v16  ;;  %v2965_v16 = vld [vmem:[#allocation5 + $0x254] ss:$24 sps:$4 sm:$0xff]   ;;  %v2960_v17 = vld [vmem:[#allocation5 + $0x548] ss:$24 sps:$4 sm:$0xff]  }
  0xb0   :  { %2019 = vmatpush1.bf16.msra.mxu1 %v2878_v20  ;;  %v2968_v20 = vld [vmem:[#allocation5 + $0x57c] ss:$24 sps:$4 sm:$0xff]  }
  0xb1   :  { %1978 = vmatpush1.bf16.msra.mxu0 %v2875_v18  ;;  %2020 = vmatprep.subr.bf16.mxu1 %v2886_v22  ;;  %v2963_v18 = vld [vmem:[#allocation5 + $0x250] ss:$24 sps:$4 sm:$0xff]  }
  0xb2   :  { %1979 = vmatprep.subr.bf16.mxu0 %v2883_v21  ;;  %v2971_v21 = vld [vmem:[#allocation5 + $0x284] ss:$24 sps:$4 sm:$0xff]   ;;  %v2966_v22 = vld [vmem:[#allocation5 + $0x578] ss:$24 sps:$4 sm:$0xff]  }
  0xb4   :  { %2021 = vmatpush1.bf16.msra.mxu1 %v2884_v25  ;;  %v2974_v25 = vld [vmem:[#allocation5 + $0x5ac] ss:$24 sps:$4 sm:$0xff]  }
  0xb5   :  { %1980 = vmatpush1.bf16.msra.mxu0 %v2881_v24  ;;  %2031 = vmatprep.subr.bf16.mxu1 %v2890_v26  ;;  %v2969_v24 = vld [vmem:[#allocation5 + $0x280] ss:$24 sps:$4 sm:$0xff]   ;;  %v2977_v26 = vld [vmem:[#allocation5 + $0x2b4] ss:$24 sps:$4 sm:$0xff]  }
  0xb6   :  { %2113 = vmatprep.subr.bf16.mxu0 %v2893_v27  ;;  %v2972_v27 = vld [vmem:[#allocation5 + $0x5a8] ss:$24 sps:$4 sm:$0xff]  }
  0xb7   :  { %2023 = vmatmul.mubr.bf16.vlgmr.msra.gmra.mrb[4].mxu1 %v3321_v13 }
  0xb8   :  { %1982 = vmatmul.mubr.bf16.vlgmr.msra.gmra.mrb[0].mxu0 %v3312_v63  ;;  %2032 = vmatpush1.bf16.msra.mxu1 %v2888_v28  ;;  %v2975_v28 = vld [vmem:[#allocation5 + $0x2b0] ss:$24 sps:$4 sm:$0xff]  }
  0xb9   :  { %2114 = vmatpush1.bf16.msra.mxu0 %v2891_v29  ;;  %2033 = vmatprep.subr.bf16.mxu1 %v2896_v30  ;;  %v2980_v29 = vld [vmem:[#allocation5 + $0x5dc] ss:$24 sps:$4 sm:$0xff]  }
  0xba   :  { %2115 = vmatprep.subr.bf16.mxu0 %v2899_v31  ;;  %2063 = vmatprep.mubr.bf16.mxu1 %v3316_v3  ;;  %v2983_v30 = vld [vmem:[#allocation5 + $0x2e4] ss:$24 sps:$4 sm:$0xff]   ;;  %v2978_v31 = vld [vmem:[#allocation5 + $0x5d8] ss:$24 sps:$4 sm:$0xff]  }
  0xbb   :  { %2145 = vmatprep.mubr.bf16.mxu0 %v3309_v62  ;;  %v2915_v62 = vld [vmem:[#allocation5 + $0xd0] ss:$24 sps:$4 sm:$0xff]  }
  0xbc   :  { %2034 = vmatpush1.bf16.msra.mxu1 %v2894_v32  ;;  %v2981_v32 = vld [vmem:[#allocation5 + $0x2e0] ss:$24 sps:$4 sm:$0xff]  }
  0xbd   :  { %2116 = vmatpush1.bf16.msra.mxu0 %v2897_v33  ;;  %2035 = vmatprep.subr.bf16.mxu1 %v2902_v34  ;;  %v2986_v33 = vld [vmem:[#allocation5 + $0x60c] ss:$24 sps:$4 sm:$0xff]  }
  0xbe   :  { %2117 = vmatprep.subr.bf16.mxu0 %v2905_v35  ;;  %v2989_v34 = vld [vmem:[#allocation5 + $0x314] ss:$24 sps:$4 sm:$0xff]   ;;  %v2984_v35 = vld [vmem:[#allocation5 + $0x608] ss:$24 sps:$4 sm:$0xff]  }
  0xc0   :  { %2036 = vmatpush1.bf16.msra.mxu1 %v2900_v37  ;;  %v2987_v37 = vld [vmem:[#allocation5 + $0x310] ss:$24 sps:$4 sm:$0xff]  }
  0xc1   :  { %2118 = vmatpush1.bf16.msra.mxu0 %v2903_v38  ;;  %2037 = vmatprep.subr.bf16.mxu1 %v2908_v39  ;;  %v2992_v38 = vld [vmem:[#allocation5 + $0x63c] ss:$24 sps:$4 sm:$0xff]  }
  0xc2   :  { %2119 = vmatprep.subr.bf16.mxu0 %v2911_v40  ;;  %v2995_v39 = vld [vmem:[#allocation5 + $0x344] ss:$24 sps:$4 sm:$0xff]   ;;  %v2990_v40 = vld [vmem:[#allocation5 + $0x638] ss:$24 sps:$4 sm:$0xff]  }
  0xc4   :  { %2038 = vmatpush1.bf16.msra.mxu1 %v2906_v41  ;;  %v2993_v41 = vld [vmem:[#allocation5 + $0x340] ss:$24 sps:$4 sm:$0xff]  }
  0xc5   :  { %2120 = vmatpush1.bf16.msra.mxu0 %v2909_v43  ;;  %2039 = vmatprep.subr.bf16.mxu1 %v2914_v44  ;;  %v2998_v43 = vld [vmem:[#allocation5 + $0x66c] ss:$24 sps:$4 sm:$0xff]  }
  0xc6   :  { %2121 = vmatprep.subr.bf16.mxu0 %v2917_v45  ;;  %v3001_v44 = vld [vmem:[#allocation5 + $0x374] ss:$24 sps:$4 sm:$0xff]   ;;  %v2996_v45 = vld [vmem:[#allocation5 + $0x668] ss:$24 sps:$4 sm:$0xff]  }
  0xc8   :  { %2040 = vmatpush1.bf16.msra.mxu1 %v2912_v46  ;;  %v2999_v46 = vld [vmem:[#allocation5 + $0x370] ss:$24 sps:$4 sm:$0xff]  }
  0xc9   :  { %2122 = vmatpush1.bf16.msra.mxu0 %v2915_v62  ;;  %2041 = vmatprep.subr.bf16.mxu1 %v2920_v47  ;;  %v3004_v62 = vld [vmem:[#allocation5 + $0x69c] ss:$24 sps:$4 sm:$0xff]   ;;  %v3002_v47 = vld [vmem:[#allocation5 + $0x698] ss:$24 sps:$4 sm:$0xff]  }
  0xca   :  { %2123 = vmatprep.subr.bf16.mxu0 %v2923_v48  ;;  %v3005_v48 = vld [vmem:[#allocation5 + $0x3a0] ss:$24 sps:$4 sm:$0xff]  }
  0xcc   :  { %2042 = vmatpush1.bf16.msra.mxu1 %v2918_v49  ;;  %v3010_v49 = vld [vmem:[#allocation5 + $0x6cc] ss:$24 sps:$4 sm:$0xff]  }
  0xcd   :  { %2124 = vmatpush1.bf16.msra.mxu0 %v2921_v50  ;;  %2043 = vmatprep.subr.bf16.mxu1 %v2926_v51  ;;  %v3013_v50 = vld [vmem:[#allocation5 + $0x3d4] ss:$24 sps:$4 sm:$0xff]   ;;  %v3008_v51 = vld [vmem:[#allocation5 + $0x6c8] ss:$24 sps:$4 sm:$0xff]  }
  0xce   :  { %2125 = vmatprep.subr.bf16.mxu0 %v2929_v52  ;;  %v3016_v52 = vld [vmem:[#allocation5 + $0x6fc] ss:$24 sps:$4 sm:$0xff]  }
  0xd0   :  { %2044 = vmatpush1.bf16.msra.mxu1 %v2924_v53  ;;  %v3019_v53 = vld [vmem:[#allocation5 + $0x404] ss:$24 sps:$4 sm:$0xff]  }
  0xd1   :  { %2126 = vmatpush1.bf16.msra.mxu0 %v2927_v54  ;;  %2045 = vmatprep.subr.bf16.mxu1 %v2932_v55  ;;  %v3014_v54 = vld [vmem:[#allocation5 + $0x6f8] ss:$24 sps:$4 sm:$0xff]  }
  0xd2   :  { %2127 = vmatprep.subr.bf16.mxu0 %v2935_v56  ;;  %v3017_v55 = vld [vmem:[#allocation5 + $0x400] ss:$24 sps:$4 sm:$0xff]   ;;  %v3022_v56 = vld [vmem:[#allocation5 + $0x72c] ss:$24 sps:$4 sm:$0xff]  }
  0xd4   :  { %2046 = vmatpush1.bf16.msra.mxu1 %v2930_v57  ;;  %v3025_v57 = vld [vmem:[#allocation5 + $0x434] ss:$24 sps:$4 sm:$0xff]  }
  0xd5   :  { %2128 = vmatpush1.bf16.msra.mxu0 %v2933_v58  ;;  %2047 = vmatprep.subr.bf16.mxu1 %v2938_v59  ;;  %v3020_v58 = vld [vmem:[#allocation5 + $0x728] ss:$24 sps:$4 sm:$0xff]  }
  0xd6   :  { %2129 = vmatprep.subr.bf16.mxu0 %v2941_v60  ;;  %v3023_v59 = vld [vmem:[#allocation5 + $0x430] ss:$24 sps:$4 sm:$0xff]   ;;  %v3028_v60 = vld [vmem:[#allocation5 + $0x75c] ss:$24 sps:$4 sm:$0xff]  }
  0xd8   :  { %2048 = vmatpush1.bf16.msra.mxu1 %v2936_v61  ;;  %v3031_v61 = vld [vmem:[#allocation5 + $0x464] ss:$24 sps:$4 sm:$0xff]  }
  0xd9   :  { %2130 = vmatpush1.bf16.msra.mxu0 %v2939_v0  ;;  %2049 = vmatprep.subr.bf16.mxu1 %v2944_v1  ;;  %v3026_v0 = vld [vmem:[#allocation5 + $0x758] ss:$24 sps:$4 sm:$0xff]  }
  0xda   :  { %2131 = vmatprep.subr.bf16.mxu0 %v2947_v2  ;;  %v3029_v1 = vld [vmem:[#allocation5 + $0x460] ss:$24 sps:$4 sm:$0xff]   ;;  %v3034_v2 = vld [vmem:[#allocation5 + $0x78c] ss:$24 sps:$4 sm:$0xff]  }
  0xdc   :  { %2050 = vmatpush1.bf16.msra.mxu1 %v2942_v4  ;;  %v3037_v4 = vld [vmem:[#allocation5 + $0x494] ss:$24 sps:$4 sm:$0xff]  }
  0xdd   :  { %2132 = vmatpush1.bf16.msra.mxu0 %v2945_v5  ;;  %2051 = vmatprep.subr.bf16.mxu1 %v2950_v6  ;;  %v3032_v5 = vld [vmem:[#allocation5 + $0x788] ss:$24 sps:$4 sm:$0xff]  }
  0xde   :  { %2133 = vmatprep.subr.bf16.mxu0 %v2953_v7  ;;  %v3035_v6 = vld [vmem:[#allocation5 + $0x490] ss:$24 sps:$4 sm:$0xff]   ;;  %v3040_v7 = vld [vmem:[#allocation5 + $0x7bc] ss:$24 sps:$4 sm:$0xff]  }
  0xe0   :  { %2052 = vmatpush1.bf16.msra.mxu1 %v2948_v8  ;;  %v3043_v8 = vld [vmem:[#allocation5 + $0x4c4] ss:$24 sps:$4 sm:$0xff]  }
  0xe1   :  { %2134 = vmatpush1.bf16.msra.mxu0 %v2951_v9  ;;  %2053 = vmatprep.subr.bf16.mxu1 %v2956_v10  ;;  %v3038_v9 = vld [vmem:[#allocation5 + $0x7b8] ss:$24 sps:$4 sm:$0xff]  }
  0xe2   :  { %2135 = vmatprep.subr.bf16.mxu0 %v2959_v11  ;;  %v3041_v10 = vld [vmem:[#allocation5 + $0x4c0] ss:$24 sps:$4 sm:$0xff]   ;;  %v3046_v11 = vld [vmem:[#allocation5 + $0x7ec] ss:$24 sps:$4 sm:$0xff]  }
  0xe4   :  { %2054 = vmatpush1.bf16.msra.mxu1 %v2954_v12  ;;  %v3049_v12 = vld [vmem:[#allocation5 + $0x4f4] ss:$24 sps:$4 sm:$0xff]  }
  0xe5   :  { %2136 = vmatpush1.bf16.msra.mxu0 %v2957_v14  ;;  %2055 = vmatprep.subr.bf16.mxu1 %v2962_v15  ;;  %v3044_v14 = vld [vmem:[#allocation5 + $0x7e8] ss:$24 sps:$4 sm:$0xff]  }
  0xe6   :  { %2137 = vmatprep.subr.bf16.mxu0 %v2965_v16  ;;  %v3047_v15 = vld [vmem:[#allocation5 + $0x4f0] ss:$24 sps:$4 sm:$0xff]   ;;  %v3052_v16 = vld [vmem:[#allocation5 + $0x81c] ss:$24 sps:$4 sm:$0xff]  }
  0xe8   :  { %2056 = vmatpush1.bf16.msra.mxu1 %v2960_v17  ;;  %v3055_v17 = vld [vmem:[#allocation5 + $0x524] ss:$24 sps:$4 sm:$0xff]  }
  0xe9   :  { %2138 = vmatpush1.bf16.msra.mxu0 %v2963_v18  ;;  %2057 = vmatprep.subr.bf16.mxu1 %v2968_v20  ;;  %v3050_v18 = vld [vmem:[#allocation5 + $0x818] ss:$24 sps:$4 sm:$0xff]  }
  0xea   :  { %2139 = vmatprep.subr.bf16.mxu0 %v2971_v21  ;;  %v3053_v20 = vld [vmem:[#allocation5 + $0x520] ss:$24 sps:$4 sm:$0xff]   ;;  %v3058_v21 = vld [vmem:[#allocation5 + $0x84c] ss:$24 sps:$4 sm:$0xff]  }
  0xec   :  { %2058 = vmatpush1.bf16.msra.mxu1 %v2966_v22  ;;  %v3061_v22 = vld [vmem:[#allocation5 + $0x554] ss:$24 sps:$4 sm:$0xff]  }
  0xed   :  { %2140 = vmatpush1.bf16.msra.mxu0 %v2969_v24  ;;  %2059 = vmatprep.subr.bf16.mxu1 %v2974_v25  ;;  %v3056_v24 = vld [vmem:[#allocation5 + $0x848] ss:$24 sps:$4 sm:$0xff]  }
  0xee   :  { %2141 = vmatprep.subr.bf16.mxu0 %v2977_v26  ;;  %v3059_v25 = vld [vmem:[#allocation5 + $0x550] ss:$24 sps:$4 sm:$0xff]   ;;  %v3064_v26 = vld [vmem:[#allocation5 + $0x87c] ss:$24 sps:$4 sm:$0xff]  }
  0xf0   :  { %2060 = vmatpush1.bf16.msra.mxu1 %v2972_v27  ;;  %v3067_v27 = vld [vmem:[#allocation5 + $0x584] ss:$24 sps:$4 sm:$0xff]  }
  0xf1   :  { %2142 = vmatpush1.bf16.msra.mxu0 %v2975_v28  ;;  %2061 = vmatprep.subr.bf16.mxu1 %v2980_v29  ;;  %v3062_v28 = vld [vmem:[#allocation5 + $0x878] ss:$24 sps:$4 sm:$0xff]  }
  0xf2   :  { %2143 = vmatprep.subr.bf16.mxu0 %v2983_v30  ;;  %v3065_v29 = vld [vmem:[#allocation5 + $0x580] ss:$24 sps:$4 sm:$0xff]   ;;  %v3070_v30 = vld [vmem:[#allocation5 + $0x8ac] ss:$24 sps:$4 sm:$0xff]  }
  0xf4   :  { %2062 = vmatpush1.bf16.msra.mxu1 %v2978_v31  ;;  %v3073_v31 = vld [vmem:[#allocation5 + $0x5b4] ss:$24 sps:$4 sm:$0xff]  }
  0xf5   :  { %2144 = vmatpush1.bf16.msra.mxu0 %v2981_v32  ;;  %2072 = vmatprep.subr.bf16.mxu1 %v2986_v33  ;;  %v3068_v32 = vld [vmem:[#allocation5 + $0x8a8] ss:$24 sps:$4 sm:$0xff]  }
  0xf6   :  { %2154 = vmatprep.subr.bf16.mxu0 %v2989_v34  ;;  %v3071_v33 = vld [vmem:[#allocation5 + $0x5b0] ss:$24 sps:$4 sm:$0xff]   ;;  %v3076_v34 = vld [vmem:[#allocation5 + $0x8dc] ss:$24 sps:$4 sm:$0xff]  }
  0xf7   :  { %2064 = vmatmul.mubr.bf16.vlgmr.msra.gmra.mrb[4].mxu1 %v3325_v19 }
  0xf8   :  { %2146 = vmatmul.mubr.bf16.vlgmr.msra.gmra.mrb[4].mxu0 %v3321_v13  ;;  %2073 = vmatpush1.bf16.msra.mxu1 %v2984_v35  ;;  %v3007_v13 = vld [vmem:[#allocation5 + $0x3a4] ss:$24 sps:$4 sm:$0xff]  }
  0xf9   :  { %2155 = vmatpush1.bf16.msra.mxu0 %v2987_v37  ;;  %2074 = vmatprep.subr.bf16.mxu1 %v2992_v38  ;;  %v3079_v35 = vld [vmem:[#allocation5 + $0x5e4] ss:$24 sps:$4 sm:$0xff]   ;;  %v3074_v37 = vld [vmem:[#allocation5 + $0x8d8] ss:$24 sps:$4 sm:$0xff]  }
  0xfa   :  { %2156 = vmatprep.subr.bf16.mxu0 %v2995_v39  ;;  %2104 = vmatprep.mubr.bf16.mxu1 %v3328_v23  ;;  %v3077_v38 = vld [vmem:[#allocation5 + $0x5e0] ss:$24 sps:$4 sm:$0xff]   ;;  %v3082_v39 = vld [vmem:[#allocation5 + $0x614] ss:$24 sps:$4 sm:$0xff]  }
  0xfb   :  { %2186 = vmatprep.mubr.bf16.mxu0 %v3316_v3  ;;  %v3011_v3 = vld [vmem:[#allocation5 + $0x3d0] ss:$24 sps:$4 sm:$0xff]  }
  0xfc   :  { %2075 = vmatpush1.bf16.msra.mxu1 %v2990_v40  ;;  %v3080_v40 = vld [vmem:[#allocation5 + $0x610] ss:$24 sps:$4 sm:$0xff]  }
  0xfd   :  { %2157 = vmatpush1.bf16.msra.mxu0 %v2993_v41  ;;  %2076 = vmatprep.subr.bf16.mxu1 %v2998_v43  ;;  %v3085_v41 = vld [vmem:[#allocation5 + $0x644] ss:$24 sps:$4 sm:$0xff]   ;;  %v3083_v43 = vld [vmem:[#allocation5 + $0x640] ss:$24 sps:$4 sm:$0xff]  }
  0xfe   :  { %2158 = vmatprep.subr.bf16.mxu0 %v3001_v44  ;;  %v3088_v44 = vld [vmem:[#allocation5 + $0x674] ss:$24 sps:$4 sm:$0xff]  }
 0x100   :  { %2077 = vmatpush1.bf16.msra.mxu1 %v2996_v45  ;;  %v3086_v45 = vld [vmem:[#allocation5 + $0x670] ss:$24 sps:$4 sm:$0xff]  }
 0x101   :  { %2159 = vmatpush1.bf16.msra.mxu0 %v2999_v46  ;;  %2078 = vmatprep.subr.bf16.mxu1 %v3004_v62  ;;  %v3091_v46 = vld [vmem:[#allocation5 + $0x6a4] ss:$24 sps:$4 sm:$0xff]   ;;  %v3089_v62 = vld [vmem:[#allocation5 + $0x6a0] ss:$24 sps:$4 sm:$0xff]  }
 0x102   :  { %2160 = vmatprep.subr.bf16.mxu0 %v3007_v13  ;;  %v3094_v13 = vld [vmem:[#allocation5 + $0x6d4] ss:$24 sps:$4 sm:$0xff]  }
 0x104   :  { %2079 = vmatpush1.bf16.msra.mxu1 %v3002_v47  ;;  %v3092_v47 = vld [vmem:[#allocation5 + $0x6d0] ss:$24 sps:$4 sm:$0xff]  }
 0x105   :  { %2161 = vmatpush1.bf16.msra.mxu0 %v3005_v48  ;;  %2080 = vmatprep.subr.bf16.mxu1 %v3010_v49  ;;  %v3097_v48 = vld [vmem:[#allocation5 + $0x704] ss:$24 sps:$4 sm:$0xff]   ;;  %v3100_v49 = vld [vmem:[#allocation5 + $0x734] ss:$24 sps:$4 sm:$0xff]  }
 0x106   :  { %2162 = vmatprep.subr.bf16.mxu0 %v3013_v50 }
 0x108   :  { %2081 = vmatpush1.bf16.msra.mxu1 %v3008_v51  ;;  %v3098_v51 = vld [vmem:[#allocation5 + $0x730] ss:$24 sps:$4 sm:$0xff]  }
 0x109   :  { %2163 = vmatpush1.bf16.msra.mxu0 %v3011_v3  ;;  %2082 = vmatprep.subr.bf16.mxu1 %v3016_v52  ;;  %v3103_v52 = vld [vmem:[#allocation5 + $0x764] ss:$24 sps:$4 sm:$0xff]  }
 0x10a   :  { %2164 = vmatprep.subr.bf16.mxu0 %v3019_v53 }
 0x10c   :  { %2083 = vmatpush1.bf16.msra.mxu1 %v3014_v54  ;;  %v3101_v54 = vld [vmem:[#allocation5 + $0x760] ss:$24 sps:$4 sm:$0xff]  }
 0x10d   :  { %2165 = vmatpush1.bf16.msra.mxu0 %v3017_v55  ;;  %2084 = vmatprep.subr.bf16.mxu1 %v3022_v56  ;;  %v3106_v55 = vld [vmem:[#allocation5 + $0x794] ss:$24 sps:$4 sm:$0xff]   ;;  %v3104_v56 = vld [vmem:[#allocation5 + $0x790] ss:$24 sps:$4 sm:$0xff]  }
 0x10e   :  { %2166 = vmatprep.subr.bf16.mxu0 %v3025_v57  ;;  %v3109_v57 = vld [vmem:[#allocation5 + $0x7c4] ss:$24 sps:$4 sm:$0xff]  }
 0x110   :  { %2085 = vmatpush1.bf16.msra.mxu1 %v3020_v58  ;;  %v3107_v58 = vld [vmem:[#allocation5 + $0x7c0] ss:$24 sps:$4 sm:$0xff]  }
 0x111   :  { %2167 = vmatpush1.bf16.msra.mxu0 %v3023_v59  ;;  %2086 = vmatprep.subr.bf16.mxu1 %v3028_v60  ;;  %v3112_v59 = vld [vmem:[#allocation5 + $0x7f4] ss:$24 sps:$4 sm:$0xff]   ;;  %v3110_v60 = vld [vmem:[#allocation5 + $0x7f0] ss:$24 sps:$4 sm:$0xff]  }
 0x112   :  { %2168 = vmatprep.subr.bf16.mxu0 %v3031_v61  ;;  %v3115_v61 = vld [vmem:[#allocation5 + $0x824] ss:$24 sps:$4 sm:$0xff]  }
 0x114   :  { %2087 = vmatpush1.bf16.msra.mxu1 %v3026_v0  ;;  %v3113_v0 = vld [vmem:[#allocation5 + $0x820] ss:$24 sps:$4 sm:$0xff]  }
 0x115   :  { %2169 = vmatpush1.bf16.msra.mxu0 %v3029_v1  ;;  %2088 = vmatprep.subr.bf16.mxu1 %v3034_v2  ;;  %v3118_v1 = vld [vmem:[#allocation5 + $0x854] ss:$24 sps:$4 sm:$0xff]   ;;  %v3116_v2 = vld [vmem:[#allocation5 + $0x850] ss:$24 sps:$4 sm:$0xff]  }
 0x116   :  { %2170 = vmatprep.subr.bf16.mxu0 %v3037_v4  ;;  %v3121_v4 = vld [vmem:[#allocation5 + $0x884] ss:$24 sps:$4 sm:$0xff]  }
 0x118   :  { %2089 = vmatpush1.bf16.msra.mxu1 %v3032_v5  ;;  %v3119_v5 = vld [vmem:[#allocation5 + $0x880] ss:$24 sps:$4 sm:$0xff]  }
 0x119   :  { %2171 = vmatpush1.bf16.msra.mxu0 %v3035_v6  ;;  %2090 = vmatprep.subr.bf16.mxu1 %v3040_v7  ;;  %v3124_v6 = vld [vmem:[#allocation5 + $0x8b4] ss:$24 sps:$4 sm:$0xff]   ;;  %v3122_v7 = vld [vmem:[#allocation5 + $0x8b0] ss:$24 sps:$4 sm:$0xff]  }
 0x11a   :  { %2172 = vmatprep.subr.bf16.mxu0 %v3043_v8  ;;  %v3127_v8 = vld [vmem:[#allocation5 + $0x8e4] ss:$24 sps:$4 sm:$0xff]  }
 0x11c   :  { %2091 = vmatpush1.bf16.msra.mxu1 %v3038_v9  ;;  %v3125_v9 = vld [vmem:[#allocation5 + $0x8e0] ss:$24 sps:$4 sm:$0xff]  }
 0x11d   :  { %2173 = vmatpush1.bf16.msra.mxu0 %v3041_v10  ;;  %2092 = vmatprep.subr.bf16.mxu1 %v3046_v11  ;;  %v345_v10 = vsub.s32 0, %v3301_v42  ;;  %v341_v11 = vld [vmem:[#allocation7] sm:$0x3f] }
 0x11e   :  { %2174 = vmatprep.subr.bf16.mxu0 %v3049_v12  ;;  %v349_v12 = vsub.s32 1, %v3301_v42 }
 0x120   :  { %2093 = vmatpush1.bf16.msra.mxu1 %v3044_v14  ;;  %v346_v14 = vrot.slane %v341_v11, %v345_v10 }
 0x121   :  { %2175 = vmatpush1.bf16.msra.mxu0 %v3047_v15  ;;  %2094 = vmatprep.subr.bf16.mxu1 %v3052_v16  ;;  %v350_v15 = vrot.slane %v341_v11, %v349_v12 }
 0x122   :  { %2176 = vmatprep.subr.bf16.mxu0 %v3055_v17 }
 0x124   :  { %2095 = vmatpush1.bf16.msra.mxu1 %v3050_v18 }
 0x125   :  { %2177 = vmatpush1.bf16.msra.mxu0 %v3053_v20  ;;  %2096 = vmatprep.subr.bf16.mxu1 %v3058_v21 }
 0x126   :  { %2178 = vmatprep.subr.bf16.mxu0 %v3061_v22 }
 0x128   :  { %2097 = vmatpush1.bf16.msra.mxu1 %v3056_v24 }
 0x129   :  { %2179 = vmatpush1.bf16.msra.mxu0 %v3059_v25  ;;  %2098 = vmatprep.subr.bf16.mxu1 %v3064_v26 }
 0x12a   :  { %2180 = vmatprep.subr.bf16.mxu0 %v3067_v27  ;;  %v353_v27 = vsub.s32 2, %v3301_v42 }
 0x12c   :  { %2099 = vmatpush1.bf16.msra.mxu1 %v3062_v28  ;;  %v357_v28 = vsub.s32 3, %v3301_v42 }
 0x12d   :  { %2181 = vmatpush1.bf16.msra.mxu0 %v3065_v29  ;;  %2100 = vmatprep.subr.bf16.mxu1 %v3070_v30  ;;  %v354_v29 = vrot.slane %v341_v11, %v353_v27 }
 0x12e   :  { %2182 = vmatprep.subr.bf16.mxu0 %v3073_v31  ;;  %v358_v30 = vrot.slane %v341_v11, %v357_v28 }
 0x130   :  { %2101 = vmatpush1.bf16.msra.mxu1 %v3068_v32 }
 0x131   :  { %2183 = vmatpush1.bf16.msra.mxu0 %v3071_v33  ;;  %2102 = vmatprep.subr.bf16.mxu1 %v3076_v34 }
 0x132   :  { %2184 = vmatprep.subr.bf16.mxu0 %v3079_v35 }
 0x134   :  { %2103 = vmatpush1.bf16.msra.mxu1 %v3074_v37 }
 0x135   :  { %2185 = vmatpush1.bf16.msra.mxu0 %v3077_v38 }
 0x136   :  { %2195 = vmatprep.subr.bf16.mxu0 %v3082_v39 }
 0x137   :  { %2105 = vmatmul.mubr.bf16.vlgmr.msra.gmra.mrb[4].mxu1 %v3312_v63 }
 0x138   :  { %2187 = vmatmul.mubr.bf16.vlgmr.msra.gmra.mrb[4].mxu0 %v3325_v19  ;;  %v3095_v19 = vld [vmem:[#allocation5 + $0x700] ss:$24 sps:$4 sm:$0xff]  }
 0x139   :  { %2196 = vmatpush1.bf16.msra.mxu0 %v3080_v40  ;;  %2227 = vmatprep.mubr.bf16.mxu0 %v3328_v23  ;;  %v361_v40 = vsub.s32 4, %v3301_v42 }
 0x13a   :  { %2197 = vmatprep.subr.bf16.mxu0 %v3085_v41  ;;  %v365_v41 = vsub.s32 5, %v3301_v42 }
 0x13d   :  { %2198 = vmatpush1.bf16.msra.mxu0 %v3083_v43  ;;  %v362_v43 = vrot.slane %v341_v11, %v361_v40 }
 0x13e   :  { %2199 = vmatprep.subr.bf16.mxu0 %v3088_v44  ;;  %v366_v44 = vrot.slane %v341_v11, %v365_v41 }
 0x141   :  { %2200 = vmatpush1.bf16.msra.mxu0 %v3086_v45 }
 0x142   :  { %2201 = vmatprep.subr.bf16.mxu0 %v3091_v46 }
 0x145   :  { %2202 = vmatpush1.bf16.msra.mxu0 %v3089_v62 }
 0x146   :  { %2203 = vmatprep.subr.bf16.mxu0 %v3094_v13 }
 0x149   :  { %2204 = vmatpush1.bf16.msra.mxu0 %v3092_v47 }
 0x14a   :  { %2205 = vmatprep.subr.bf16.mxu0 %v3097_v48  ;;  %v1901_v50 = vpop.f32.mrb[0].mxu1 }
 0x14b   :  { %v1903_v23 = vpop.f32.mrb[1].mxu1  ;;  %v1902_v16 = vadd.f32 %v1901_v50, %v346_v14 }
 0x14c   :  { %v1905_v3 = vpop.f32.mrb[2].mxu1  ;;  %v1904_v17 = vadd.f32 %v1903_v23, %v350_v15 }
 0x14d   :  { %2206 = vmatpush1.bf16.msra.mxu0 %v3095_v19  ;;  %v1906_v53 = vpop.f32.mrb[3].mxu1 }
 0x14e   :  { %2207 = vmatprep.subr.bf16.mxu0 %v3100_v49  ;;  %v2255_v53 = vand.u32 127, %v343_v36 }
 0x150   :  { %vm2256_vm0 = vcmp.lt.s32.totalorder %v2255_v53, 127  ;;  %vm2281_vm1 = vcmp.lt.s32.totalorder %v2255_v53, 126 }
 0x151   :  { %2208 = vmatpush1.bf16.msra.mxu0 %v3098_v51 }
 0x152   :  { %2209 = vmatprep.subr.bf16.mxu0 %v3103_v52 }
 0x155   :  { %2210 = vmatpush1.bf16.msra.mxu0 %v3101_v54 }
 0x156   :  { %2211 = vmatprep.subr.bf16.mxu0 %v3106_v55 }
 0x159   :  { %2212 = vmatpush1.bf16.msra.mxu0 %v3104_v56 }
 0x15a   :  { %2213 = vmatprep.subr.bf16.mxu0 %v3109_v57 }
 0x15d   :  { %2214 = vmatpush1.bf16.msra.mxu0 %v3107_v58 }
 0x15e   :  { %2215 = vmatprep.subr.bf16.mxu0 %v3112_v59 }
 0x161   :  { %2216 = vmatpush1.bf16.msra.mxu0 %v3110_v60 }
 0x162   :  { %2217 = vmatprep.subr.bf16.mxu0 %v3115_v61 }
 0x165   :  { %2218 = vmatpush1.bf16.msra.mxu0 %v3113_v0 }
 0x166   :  { %2219 = vmatprep.subr.bf16.mxu0 %v3118_v1  ;;  %v3242_v1 = vmov 1983009808  }
 0x169   :  { %2220 = vmatpush1.bf16.msra.mxu0 %v3116_v2  ;;  %v2326_v2 = vunpack.c.l.s4 %v3242_v1 }
 0x16a   :  { %2221 = vmatprep.subr.bf16.mxu0 %v3121_v4 }
 0x16d   :  { %2222 = vmatpush1.bf16.msra.mxu0 %v3119_v5 }
 0x16e   :  { %2223 = vmatprep.subr.bf16.mxu0 %v3124_v6 }
 0x171   :  { %2224 = vmatpush1.bf16.msra.mxu0 %v3122_v7  ;;  %v2327_v7 = vunpack.c.0.s8 %v2326_v2 }
 0x172   :  { %2225 = vmatprep.subr.bf16.mxu0 %v3127_v8 }
 0x175   :  { %2226 = vmatpush1.bf16.msra.mxu0 %v3125_v9 }
 0x178   :  { %2228 = vmatmul.mubr.bf16.vlgmr.msra.gmra.mrb[4].mxu0 %v3312_v63 }
 0x18b   :  { %v1983_v18 = vpop.f32.mrb[0].mxu0 }
 0x18c   :  { %v2658_v20 = vadd.f32 %v1983_v18, %v1902_v16  ;;  %v1985_v21 = vpop.f32.mrb[1].mxu0  ;;  %v2330_v18 = vsub.s32 %v2327_v7, %v3301_v42 }
 0x18d   :  { %v2660_v22 = vadd.f32 %v1985_v21, %v1904_v17  ;;  %v1987_v24 = vpop.f32.mrb[2].mxu0 }
 0x18e   :  { %3128 = vtanh.f32 %v2658_v20  ;;  %v1988_v25 = vpop.f32.mrb[3].mxu0 }
 0x18f   :  { %3130 = vtanh.f32 %v2660_v22 }
 0x198   :  { %v3348_v26 = vpop.eup %3128 }
 0x199   :  { %2269 = vrot.lane.b32.xlu1 %v3348_v26, %s3240_s2  ;;  %2242 = vrot.lane.b32.xlu0 %v3348_v26, %s3241_s21  ;;  %v3131_v63 = vpop.eup %3130 }
 0x19d   :  { %2244 = vrot.lane.b32.xlu0 %v3131_v63, %s3241_s21 }
 0x1a1   :  { %2271 = vrot.lane.b32.xlu0 %v3131_v63, %s3240_s2 }
 0x20a   :  { %v2106_v31 = vpop.f32.mrb[4].mxu1 }
 0x20b   :  { %v2661_v32 = vadd.f32 %v2106_v31, %v354_v29  ;;  %v2108_v33 = vpop.f32.mrb[5].mxu1  ;;  %v2270_v50 = vpop.permute.xlu1 %2269 }
 0x20c   :  { %v2662_v34 = vadd.f32 %v2108_v33, %v358_v30  ;;  %v2110_v35 = vpop.f32.mrb[6].mxu1  ;;  %v2243_v23 = vpop.permute.xlu0 %2242 }
 0x20d   :  { %3132 = vtanh.f32 %v2661_v32  ;;  %v2111_v37 = vpop.f32.mrb[7].mxu1 }
 0x20e   :  { %3134 = vtanh.f32 %v2662_v34 }
 0x210   :  { %v2245_v3 = vpop.permute.xlu0 %2244 }
 0x211   :  { %v2261_v57 = vsel %vm2256_vm0, %v2243_v23, %v2245_v3 }
 0x212   :  { %v2263_v36 = vadd.f32 %v3348_v26, %v2261_v57 }
 0x214   :  { %v2272_v54 = vpop.permute.xlu0 %2271 }
 0x215   :  { %v2286_v61 = vsel %vm2281_vm1, %v2270_v50, %v2272_v54 }
 0x216   :  { %v2288_v6 = vadd.f32 %v2286_v61, %v2263_v36 }
 0x217   :  { %v3133_v38 = vpop.eup %3132 }
 0x218   :  { %v3135_v39 = vpop.eup %3134  ;;  %2246 = vrot.lane.b32.xlu1 %v3133_v38, %s3241_s21  ;;  %v2294_v16 = vmul.f32 0.33333334, %v2288_v6 }
 0x219   :  { %2275 = vrot.lane.b32.xlu0 %v3135_v39, %s3240_s2 }
 0x21c   :  { %2273 = vrot.lane.b32.xlu1 %v3133_v38, %s3240_s2 }
 0x220   :  { %2248 = vrot.lane.b32.xlu1 %v3135_v39, %s3241_s21 }
 0x24b   :  { %v2229_v45 = vpop.f32.mrb[4].mxu0 }
 0x24c   :  { %v2663_v46 = vadd.f32 %v2229_v45, %v362_v43  ;;  %v2231_v62 = vpop.f32.mrb[5].mxu0 }
 0x24d   :  { %v2233_v13 = vpop.f32.mrb[6].mxu0  ;;  %v2664_v47 = vadd.f32 %v2231_v62, %v366_v44 }
 0x24e   :  { %3136 = vtanh.f32 %v2663_v46  ;;  %v2234_v48 = vpop.f32.mrb[7].mxu0 }
 0x24f   :  { %3138 = vtanh.f32 %v2664_v47 }
 0x258   :  { %v3137_v19 = vpop.eup %3136 }
 0x259   :  { %2277 = vrot.lane.b32.xlu1 %v3137_v19, %s3240_s2  ;;  %2250 = vrot.lane.b32.xlu0 %v3137_v19, %s3241_s21  ;;  %v3139_v49 = vpop.eup %3138 }
 0x25d   :  { %2279 = vrot.lane.b32.xlu1 %v3139_v49, %s3240_s2  ;;  %2252 = vrot.lane.b32.xlu0 %v3139_v49, %s3241_s21 }
 0x28a   :  { %v2247_v51 = vpop.permute.xlu1 %2246 }
 0x28b   :  { %v2260_v55 = vsel %vm2256_vm0, %v2245_v3, %v2247_v51  ;;  %v2276_v0 = vpop.permute.xlu0 %2275 }
 0x28c   :  { %v2264_v59 = vadd.f32 %v3131_v63, %v2260_v55  ;;  %v2304_v63 = vadd.s32 640, %v2255_v53 }
 0x28e   :  { %v2274_v52 = vpop.permute.xlu1 %2273  ;;  %vm2310_vm2 = vcmp.lt.s32.totalorder %v2304_v63, 766 }
 0x28f   :  { %v2285_v58 = vsel %vm2281_vm1, %v2272_v54, %v2274_v52  ;;  %v2284_v10 = vsel %vm2281_vm1, %v2274_v52, %v2276_v0 }
 0x290   :  { %v2289_v4 = vadd.f32 %v2285_v58, %v2264_v59 }
 0x292   :  { %v2249_v56 = vpop.permute.xlu1 %2248  ;;  %v2295_v11 = vmul.f32 0.33333334, %v2289_v4 }
 0x293   :  { %v2259_v60 = vsel %vm2256_vm0, %v2247_v51, %v2249_v56 }
 0x294   :  { %v2265_v5 = vadd.f32 %v3133_v38, %v2259_v60  ;;  %v2323_v24 = vcombine.low %v2294_v16, %v2295_v11 }
 0x296   :  { %v2290_v14 = vadd.f32 %v2284_v10, %v2265_v5  ;;  %v2331_v35 = vrot.slane %v2323_v24, %v2330_v18 }
 0x298   :  { %v2296_v27 = vmul.f32 0.33333334, %v2290_v14 }
 0x2cb   :  { %v2278_v8 = vpop.permute.xlu1 %2277  ;;  %v2251_v9 = vpop.permute.xlu0 %2250 }
 0x2cc   :  { %v2258_v12 = vsel %vm2256_vm0, %v2249_v56, %v2251_v9  ;;  %v2283_v17 = vsel %vm2281_vm1, %v2276_v0, %v2278_v8 }
 0x2cd   :  { %v2266_v15 = vadd.f32 %v3135_v39, %v2258_v12 }
 0x2cf   :  { %v2291_v20 = vadd.f32 %v2283_v17, %v2266_v15  ;;  %v2280_v21 = vpop.permute.xlu1 %2279  ;;  %v2253_v22 = vpop.permute.xlu0 %2252 }
 0x2d0   :  { %v2257_v25 = vsel %vm2256_vm0, %v2251_v9, %v2253_v22  ;;  %v2262_v26 = vsel %vm2256_vm0, %v2253_v22, %v2243_v23  ;;  %v2282_v31 = vsel %vm2281_vm1, %v2278_v8, %v2280_v21  ;;  %v2287_v32 = vsel %vm2281_vm1, %v2280_v21, %v2270_v50 }
 0x2d1   :  { %v2297_v28 = vmul.f32 0.33333334, %v2291_v20  ;;  %v2267_v29 = vadd.f32 %v3137_v19, %v2257_v25  ;;  %v2268_v30 = vadd.f32 %v3139_v49, %v2262_v26 }
 0x2d3   :  { %v2324_v33 = vcombine.low %v2296_v27, %v2297_v28  ;;  %v2292_v34 = vadd.f32 %v2282_v31, %v2267_v29  ;;  %v2293_v42 = vadd.f32 %v2287_v32, %v2268_v30 }
 0x2d5   :  { %v2298_v37 = vmul.f32 0.33333334, %v2292_v34  ;;  %v2299_v38 = vmul.f32 0.33333334, %v2293_v42  ;;  %v2338_v39 = vrot.slane %v2324_v33, %v2330_v18 }
 0x2d7   :  { %v2316_v40 = vsel %vm2310_vm2, %v2299_v38, 0.0  ;;  %v2339_v41 = vcombine.low %v2331_v35, %v2338_v39 }
 0x2d8   :  { %v2340_v43 = vcombine.low %v2298_v37, %v2316_v40 }
 0x2d9   :  { %2350 = vst [vmem:[#allocation8] sm:$0xff] %v2339_v41 }
 0x2da   :  { %2656 = vst.sshfl [vmem:[#allocation8 + $0x8] sm:$0x33 pattern:$0x76325410] %v2340_v43 }
 0x2db   :  { %3217 = shalt.err (!%p3214_p0)
}
 0x2dc   :  { %s3218_s27 = scalar_lea.hbm %s3398_s3, 192 }
 0x2dd   :  { %p3219_p1 = scmp.ne.s32.totalorder %s3398_s3, %s3218_s27  ;;  %p3222_p2 = scmp.lt.u32.totalorder %s3218_s27, %s3398_s3 }
 0x2df   :  { %p3224_p3 = pnand %p3222_p2, %p3219_p1 }
 0x2e1   :  { %3227 = shalt.err (!%p3224_p3)
}
 0x2e2   :  { %2361 = dma.vmem_to_hbm [thread:$0]  %s2359_s23, 192, %s3398_s3, [#allocation4]  }
 0x2e3   :  { %3232 = dma.done.wait [#allocation4], 192  }
 0x2e4   :  { %3233 = vsyncadd [#allocation4], 4294967104 }
 0x2e5   :  { %2365 = vsyncpa [#allocation3], 1 }
 0x2e6   :  { %2366 = vsyncpa [#allocation6], 1 }
 0x2e7   :  { %2367 = vsyncpa [#allocation4], 1 }

</bundles_post_ra>
